<compile_context>
chip_gen: v5e
topology: v5e:2x2
jax: 0.10.0
libtpu: 0.0.40
codegen_flags: <defaults>
</compile_context>

<pallas_src>
import functools

import numpy as np
import jax
import jax.numpy as jnp
from jax import lax
from jax.experimental import pallas as pl
from jax.experimental.pallas import tpu as pltpu

LANES = 128          # lane-dense packing width for every VMEM operand / the output
BIG = 40.0           # sigmoid(40.)  == 1.0 exactly in f32 (has_active lane)
NEG = -1.0e5         # sigmoid(-1e5) == 0.0 exactly in f32 (masked tokens)

# rows of the packed (8, 128) constants slab
_BIAS, _WC, _START, _NONSTART, _REAL, _OUTB = range(6)
_NCONST = 8          # padded to a full sublane tile


# ----------------------------------------------------------------------------
# The fused kernel.
# ----------------------------------------------------------------------------
def _sopa_kernel(docs_ref, dl_ref,                       # scalar-prefetch (SMEM)
                 emb_vt_ref, diags_t_ref, consts_ref,    # VMEM inputs
                 end_sel_ref, w_big_ref,
                 out_ref,                                # (B, 128) packed output
                 table_ref, e_ref,                       # VMEM scratch
                 *, T, B, P, tau, eps):
    f32 = jnp.float32
    consts = consts_ref[...]                             # (8, 128)
    bias_row = consts[_BIAS]                             # bias_scale*bias, lane-padded
    wc_row = consts[_WC]                                 # wildcard logits (+BIG at lane D)

    # (1) transition *logit* table, bias add + wildcard max pre-folded per lane.
    #     sigmoid is monotone => sigmoid(max(a, b)) == max(sigmoid(a), sigmoid(b)),
    #     so the single sigmoid can run after the gather (step 3).
    logits = jnp.dot(emb_vt_ref[...], diags_t_ref[...], preferred_element_type=f32)
    table_ref[...] = jnp.maximum(logits + bias_row, wc_row)           # (V, 128)

    # (2) scalar-prefetch-driven row gather (no one-hot matmul, no id vectors in
    #     VMEM).  Doc-length masking is folded into the rows: inactive tokens get
    #     NEG so that sigmoid()==0 and they never win the semiring max.
    for t in range(T):
        for b in range(B):
            active = dl_ref[b] > t
            row = table_ref[docs_ref[t, b]]                            # (128,) dynamic row
            e_ref[t, b] = jnp.where(active, row, NEG)

    # (3) one vectorized sigmoid pass over the gathered rows only (EUP).
    e_all = jax.nn.sigmoid(e_ref[...])                                 # (T, B, 128)

    # (4) SoPa recurrence.  Lane layout (128 wide):
    #       lanes [0, D)   : hiddens[:, :, 1:]   (tail states, pattern-major)
    #       lane  D        : has_active tracker  (restart-like lane, e == mask)
    #       lanes (D, 128) : zero padding
    #     "shift state by one" = lane roll on the XLU; restart lanes re-injected.
    start = consts[_START]
    nonstart = consts[_NONSTART]
    tail = jnp.zeros((B, LANES), f32)
    acc = jnp.zeros((B, LANES), f32)     # running semiring max of end-lane candidates
    for t in range(T):                   # TODO(synk): fori_loop / grid axis at real T
        h_prev = pltpu.roll(tail, shift=1, axis=1) * nonstart + start
        tail = h_prev * e_all[t]
        acc = jnp.maximum(acc, tail)

    # (5) per-pattern end-state pick: one (B,128)@(128,128) matmul.  Patterns whose
    #     end state is the restart column route through the has_active lane (row D).
    scores_p = jnp.dot(acc, end_sel_ref[...], preferred_element_type=f32)   # (B,128)

    # (6) head: MaskedLayerNorm (no mask / no affine) -> TauSTE (strict >) -> Linear,
    #     all in the packed 128-lane layout; logits land in lanes [P, P+C).
    real = consts[_REAL]
    inv_p = 1.0 / P
    mean = jnp.sum(scores_p, axis=1, keepdims=True) * inv_p
    centered = (scores_p - mean) * real
    var = jnp.sum(centered * centered, axis=1, keepdims=True) * inv_p
    norm = centered * lax.rsqrt(var + eps)
    binarized = (norm > tau).astype(f32) * real
    logits_out = (jnp.dot(binarized, w_big_ref[...], preferred_element_type=f32)
                  + consts[_OUTB])
    out_ref[...] = scores_p + logits_out          # single lane-dense (B, 128) store


# ----------------------------------------------------------------------------
# Structural constants derived from pattern_specs (host-side, built once).
# ----------------------------------------------------------------------------
def build_structure(pattern_specs, max_len, num_classes):
    P = sum(pattern_specs.values())
    Lm1 = max_len - 1
    D = P * Lm1
    assert D + 1 <= LANES and P + num_classes <= LANES, "config exceeds 128-lane packing"
    end_idx = [plen - 1 for plen, n in pattern_specs.items() for _ in range(n)]

    group_starts = np.arange(0, D, Lm1)
    start = np.zeros((LANES,), np.float32)
    start[group_starts] = 1.0
    start[D] = 1.0                        # has_active tracker behaves like a restart lane
    nonstart = np.zeros((LANES,), np.float32)
    nonstart[:D] = 1.0
    nonstart[group_starts] = 0.0

    end_sel = np.zeros((LANES, LANES), np.float32)
    for p, e in enumerate(end_idx):
        if e == 0:
            end_sel[D, p] = 1.0           # end state is the restart column -> has_active
        else:
            end_sel[p * Lm1 + (e - 1), p] = 1.0

    real = np.zeros((LANES,), np.float32)
    real[:P] = 1.0
    return start, nonstart, end_sel, real


# ----------------------------------------------------------------------------
# Wrapper: layout plumbing + a single pallas_call.
# ----------------------------------------------------------------------------
def soft_pattern_classifier(local_embeddings, docs, doc_lens, params, pattern_specs,
                            bias_scale=1.0, tau=0.0, eps=1e-5):
    E, V = local_embeddings.shape
    B, T = docs.shape
    P, Lm1 = params["wildcards"].shape
    D = P * Lm1
    C = params["lin_w"].shape[0]
    start, nonstart, end_sel, real = build_structure(pattern_specs, Lm1 + 1, C)

    f32 = jnp.float32
    zrow = jnp.zeros((LANES,), f32)

    # lane-dense (128-wide) operand slabs
    emb_vt = local_embeddings.T.astype(f32)                                  # (V, E)
    diags_t = jnp.zeros((E, LANES), f32).at[:, :D].set(params["diags"].T)    # (E, 128)
    bias_row = zrow.at[:D].set(bias_scale * params["bias"][:, 0])
    wc_row = zrow.at[:D].set(params["wildcards"].reshape(D)).at[D].set(BIG)
    outb_row = zrow.at[P:P + C].set(params["lin_b"])
    w_big = jnp.zeros((LANES, LANES), f32).at[:P, P:P + C].set(params["lin_w"].T)
    consts = jnp.stack([bias_row, wc_row, jnp.asarray(start), jnp.asarray(nonstart),
                        jnp.asarray(real), outb_row, zrow, zrow])            # (8, 128)

    docs_tb = docs.T.astype(jnp.int32)     # (T, B) token-major; requires 0 <= id < V
    dl = doc_lens.astype(jnp.int32)        # (B,)

    def fullmap(i, docs_s, dl_s):          # scalar-prefetch refs are positional args
        return (0, 0)

    grid_spec = pltpu.PrefetchScalarGridSpec(
        num_scalar_prefetch=2,
        grid=(1,),                         # TODO(synk): 'parallel' batch axis for v7x
        in_specs=[pl.BlockSpec((V, E), fullmap),
                  pl.BlockSpec((E, LANES), fullmap),
                  pl.BlockSpec((_NCONST, LANES), fullmap),
                  pl.BlockSpec((LANES, LANES), fullmap),
                  pl.BlockSpec((LANES, LANES), fullmap)],
        out_specs=pl.BlockSpec((B, LANES), fullmap),
        scratch_shapes=[pltpu.VMEM((V, LANES), f32),       # transition logit table
                        pltpu.VMEM((T, B, LANES), f32)],   # gathered per-token rows
    )

    packed = pl.pallas_call(
        functools.partial(_sopa_kernel, T=T, B=B, P=P, tau=float(tau), eps=float(eps)),
        out_shape=jax.ShapeDtypeStruct((B, LANES), f32),
        grid_spec=grid_spec,
        compiler_params=pltpu.CompilerParams(
            dimension_semantics=("arbitrary",),
            vmem_limit_bytes=32 * 1024 * 1024),
    )(docs_tb, dl, emb_vt, diags_t, consts, jnp.asarray(end_sel), w_big)

    return packed[:, :P], packed[:, P:P + C]


# ----------------------------------------------------------------------------
if __name__ == "__main__":
    # ---- model config (implied by __init__) ---------------------------------
    pattern_specs = {3: 4, 4: 4, 5: 4}       # OrderedDict[pattern_len -> n_patterns]
    P = sum(pattern_specs.values())          # total_num_patterns = 12
    L = max(pattern_specs.keys())            # max_pattern_length = 5
    D = P * (L - 1)                          # diags rows = 48
    E = 32                                   # embedding_dim
    C = 3                                    # num_classes
    B, T, V = 2, 8, 16                       # batch, max_doc_len, local vocab size
    bias_scale = 1.0
    tau = 0.0

    key = jax.random.PRNGKey(0)
    keys = jax.random.split(key, 8)

    def xavier_normal(k, shape):
        fan_out, fan_in = shape[0], shape[1]
        std = float(np.sqrt(2.0 / (fan_in + fan_out)))
        return std * jax.random.normal(k, shape, dtype=jnp.float32)

    params = {
        "diags": xavier_normal(keys[0], (D, E)),
        "bias": xavier_normal(keys[1], (D, 1)),
        "wildcards": xavier_normal(keys[2], (P, L - 1)),
        "lin_w": xavier_normal(keys[3], (C, P)),
        "lin_b": 0.01 * jax.random.normal(keys[4], (C,), dtype=jnp.float32),
    }

    local_embeddings = jax.random.normal(keys[5], (E, V), dtype=jnp.float32)
    docs = jax.random.randint(keys[6], (B, T), 0, V, dtype=jnp.int32)
    doc_lens = jnp.array([T, T - 3], dtype=jnp.int32)

    # ---- fused Pallas forward ------------------------------------------------
    scores, logits = soft_pattern_classifier(local_embeddings, docs, doc_lens,
                                             params, pattern_specs, bias_scale, tau)
    logits = jax.block_until_ready(logits)
    scores = jax.block_until_ready(scores)

    # ---- pure-JAX reference (torch-faithful) ---------------------------------
    def reference_forward():
        end_idx = jnp.array([plen - 1 for plen, n in pattern_specs.items()
                             for _ in range(n)], dtype=jnp.int32)           # (P,)
        end_mask = (jnp.arange(L)[None, :] == end_idx[:, None]).astype(jnp.float32)
        wc = jax.nn.sigmoid(params["wildcards"])
        tm_all = jax.nn.sigmoid(params["diags"] @ local_embeddings
                                + bias_scale * params["bias"]).T            # (V, D)
        tm_docs = jnp.take(tm_all.reshape(V, P, L - 1), docs, axis=0)       # (B,T,P,L-1)
        hid0 = jnp.concatenate([jnp.ones((B, P, 1)), jnp.zeros((B, P, L - 1))], axis=2)
        sc0 = jnp.zeros((B, P))

        def step(carry, t):
            hid, sc = carry
            tm = tm_docs[:, t]
            hp = hid[:, :, :-1]
            tail = jnp.maximum(hp * tm, hp * wc[None])
            hid = jnp.concatenate([jnp.ones((B, P, 1)), tail], axis=2)
            ev = jnp.sum(hid * end_mask[None], axis=2)
            sc = jnp.where((doc_lens > t)[:, None], jnp.maximum(sc, ev), sc)
            return (hid, sc), None

        (_, sc), _ = lax.scan(step, (hid0, sc0), jnp.arange(T))
        mean = jnp.mean(sc, axis=1, keepdims=True)
        var = jnp.mean((sc - mean) ** 2, axis=1, keepdims=True)
        norm = (sc - mean) * lax.rsqrt(var + 1e-5)
        binr = (norm > tau).astype(jnp.float32)
        lg = binr @ params["lin_w"].T + params["lin_b"][None, :]
        return sc, lg

    ref_scores, ref_logits = jax.block_until_ready(reference_forward())
    assert np.allclose(np.asarray(scores), np.asarray(ref_scores), atol=1e-5), \
        "scores mismatch"
    assert np.allclose(np.asarray(logits), np.asarray(ref_logits), atol=1e-4), \
        "logits mismatch"
    assert logits.shape == (B, C)

    print("KERNEL_OK")
</pallas_src>

<mosaic_0001>
module attributes {stable_mosaic.version = 11 : i64} {
  func.func @_sopa_kernel(%arg0: i32, %arg1: memref<8x2xi32, #tpu.memory_space<smem>>, %arg2: memref<2xi32, #tpu.memory_space<smem>>, %arg3: memref<16x32xf32, #tpu.memory_space<vmem>>, %arg4: memref<32x128xf32, #tpu.memory_space<vmem>>, %arg5: memref<8x128xf32, #tpu.memory_space<vmem>>, %arg6: memref<128x128xf32, #tpu.memory_space<vmem>>, %arg7: memref<128x128xf32, #tpu.memory_space<vmem>>, %arg8: memref<2x128xf32, #tpu.memory_space<vmem>>, %arg9: memref<16x128xf32, #tpu.memory_space<vmem>>, %arg10: memref<8x2x128xf32, #tpu.memory_space<vmem>>) attributes {dimension_semantics = [#tpu.dimension_semantics<arbitrary>], iteration_bounds = array<i64: 1>, scalar_prefetch = 2 : i64, scratch_operands = 2 : i64, tpu.core_type = #tpu.core_type<tc>, window_params = [{pipeline_mode = #tpu.pipeline_mode<synchronous>, transform_indices = @transform_0, window_bounds = array<i64: 16, 32>}, {pipeline_mode = #tpu.pipeline_mode<synchronous>, transform_indices = @transform_1, window_bounds = array<i64: 32, 128>}, {pipeline_mode = #tpu.pipeline_mode<synchronous>, transform_indices = @transform_2, window_bounds = array<i64: 8, 128>}, {pipeline_mode = #tpu.pipeline_mode<synchronous>, transform_indices = @transform_3, window_bounds = array<i64: 128, 128>}, {pipeline_mode = #tpu.pipeline_mode<synchronous>, transform_indices = @transform_4, window_bounds = array<i64: 128, 128>}, {pipeline_mode = #tpu.pipeline_mode<synchronous>, transform_indices = @transform_5, window_bounds = array<i64: 2, 128>}]} {
    %c0 = arith.constant 0 : index
    %c0_0 = arith.constant 0 : index
    %0 = vector.load %arg5[%c0, %c0_0] : memref<8x128xf32, #tpu.memory_space<vmem>>, vector<8x128xf32>
    %1 = vector.extract_strided_slice %0 {offsets = [0, 0], sizes = [1, 128], strides = [1, 1]} : vector<8x128xf32> to vector<1x128xf32>
    %2 = vector.shape_cast %1 : vector<1x128xf32> to vector<128xf32>
    %3 = vector.extract_strided_slice %0 {offsets = [1, 0], sizes = [1, 128], strides = [1, 1]} : vector<8x128xf32> to vector<1x128xf32>
    %4 = vector.shape_cast %3 : vector<1x128xf32> to vector<128xf32>
    %c0_1 = arith.constant 0 : index
    %c0_2 = arith.constant 0 : index
    %5 = vector.load %arg3[%c0_1, %c0_2] : memref<16x32xf32, #tpu.memory_space<vmem>>, vector<16x32xf32>
    %c0_3 = arith.constant 0 : index
    %c0_4 = arith.constant 0 : index
    %6 = vector.load %arg4[%c0_3, %c0_4] : memref<32x128xf32, #tpu.memory_space<vmem>>, vector<32x128xf32>
    %cst = arith.constant dense<0.000000e+00> : vector<16x128xf32>
    %7 = tpu.matmul %5, %6, %cst {dimension_numbers = #tpu.dot_dimension_numbers<[1], [0], [0], [1], [0, 0, 1, 1], [], []>} : vector<16x32xf32>, vector<32x128xf32>, vector<16x128xf32> -> vector<16x128xf32>
    %8 = vector.shape_cast %2 : vector<128xf32> to vector<1x128xf32>
    %9 = vector.broadcast %8 : vector<1x128xf32> to vector<16x128xf32>
    %10 = arith.addf %7, %9 : vector<16x128xf32>
    %11 = vector.shape_cast %4 : vector<128xf32> to vector<1x128xf32>
    %12 = vector.broadcast %11 : vector<1x128xf32> to vector<16x128xf32>
    %13 = arith.maximumf %10, %12 : vector<16x128xf32>
    %c0_5 = arith.constant 0 : index
    %c0_6 = arith.constant 0 : index
    %14 = vector.load %arg9[%c0_5, %c0_6] : memref<16x128xf32, #tpu.memory_space<vmem>>, vector<16x128xf32>
    tpu.vector_store %arg9[%c0_5, %c0_6], %13 {strides = array<i32>} : memref<16x128xf32, #tpu.memory_space<vmem>>, vector<16x128xf32>,
    %c0_7 = arith.constant 0 : index
    %15 = memref.load %arg2[%c0_7] : memref<2xi32, #tpu.memory_space<smem>>
    %c0_i32 = arith.constant 0 : i32
    %16 = arith.cmpi sgt, %15, %c0_i32 : i32
    %c0_8 = arith.constant 0 : index
    %c0_9 = arith.constant 0 : index
    %17 = memref.load %arg1[%c0_8, %c0_9] : memref<8x2xi32, #tpu.memory_space<smem>>
    %18 = arith.index_cast %17 : i32 to index
    %c0_10 = arith.constant 0 : index
    %19 = vector.load %arg9[%18, %c0_10] : memref<16x128xf32, #tpu.memory_space<vmem>>, vector<1x128xf32>
    %20 = vector.shape_cast %19 : vector<1x128xf32> to vector<128xf32>
    %cst_11 = arith.constant -1.000000e+05 : f32
    %21 = vector.broadcast %cst_11 : f32 to vector<128xf32>
    %22 = arith.select %16, %20, %21 : vector<128xf32>
    %c0_12 = arith.constant 0 : index
    %c0_13 = arith.constant 0 : index
    %c0_14 = arith.constant 0 : index
    %23 = vector.load %arg10[%c0_12, %c0_13, %c0_14] : memref<8x2x128xf32, #tpu.memory_space<vmem>>, vector<1x1x128xf32>
    %24 = vector.shape_cast %23 : vector<1x1x128xf32> to vector<128xf32>
    %25 = vector.shape_cast %22 : vector<128xf32> to vector<1x1x128xf32>
    tpu.vector_store %arg10[%c0_12, %c0_13, %c0_14], %25 {strides = array<i32>} : memref<8x2x128xf32, #tpu.memory_space<vmem>>, vector<1x1x128xf32>,
    %c1 = arith.constant 1 : index
    %26 = memref.load %arg2[%c1] : memref<2xi32, #tpu.memory_space<smem>>
    %c0_i32_15 = arith.constant 0 : i32
    %27 = arith.cmpi sgt, %26, %c0_i32_15 : i32
    %c0_16 = arith.constant 0 : index
    %c1_17 = arith.constant 1 : index
    %28 = memref.load %arg1[%c0_16, %c1_17] : memref<8x2xi32, #tpu.memory_space<smem>>
    %29 = arith.index_cast %28 : i32 to index
    %c0_18 = arith.constant 0 : index
    %30 = vector.load %arg9[%29, %c0_18] : memref<16x128xf32, #tpu.memory_space<vmem>>, vector<1x128xf32>
    %31 = vector.shape_cast %30 : vector<1x128xf32> to vector<128xf32>
    %cst_19 = arith.constant -1.000000e+05 : f32
    %32 = vector.broadcast %cst_19 : f32 to vector<128xf32>
    %33 = arith.select %27, %31, %32 : vector<128xf32>
    %c0_20 = arith.constant 0 : index
    %c1_21 = arith.constant 1 : index
    %c0_22 = arith.constant 0 : index
    %34 = vector.load %arg10[%c0_20, %c1_21, %c0_22] : memref<8x2x128xf32, #tpu.memory_space<vmem>>, vector<1x1x128xf32>
    %35 = vector.shape_cast %34 : vector<1x1x128xf32> to vector<128xf32>
    %36 = vector.shape_cast %33 : vector<128xf32> to vector<1x1x128xf32>
    tpu.vector_store %arg10[%c0_20, %c1_21, %c0_22], %36 {strides = array<i32>} : memref<8x2x128xf32, #tpu.memory_space<vmem>>, vector<1x1x128xf32>,
    %c0_23 = arith.constant 0 : index
    %37 = memref.load %arg2[%c0_23] : memref<2xi32, #tpu.memory_space<smem>>
    %c1_i32 = arith.constant 1 : i32
    %38 = arith.cmpi sgt, %37, %c1_i32 : i32
    %c1_24 = arith.constant 1 : index
    %c0_25 = arith.constant 0 : index
    %39 = memref.load %arg1[%c1_24, %c0_25] : memref<8x2xi32, #tpu.memory_space<smem>>
    %40 = arith.index_cast %39 : i32 to index
    %c0_26 = arith.constant 0 : index
    %41 = vector.load %arg9[%40, %c0_26] : memref<16x128xf32, #tpu.memory_space<vmem>>, vector<1x128xf32>
    %42 = vector.shape_cast %41 : vector<1x128xf32> to vector<128xf32>
    %cst_27 = arith.constant -1.000000e+05 : f32
    %43 = vector.broadcast %cst_27 : f32 to vector<128xf32>
    %44 = arith.select %38, %42, %43 : vector<128xf32>
    %c1_28 = arith.constant 1 : index
    %c0_29 = arith.constant 0 : index
    %c0_30 = arith.constant 0 : index
    %45 = vector.load %arg10[%c1_28, %c0_29, %c0_30] : memref<8x2x128xf32, #tpu.memory_space<vmem>>, vector<1x1x128xf32>
    %46 = vector.shape_cast %45 : vector<1x1x128xf32> to vector<128xf32>
    %47 = vector.shape_cast %44 : vector<128xf32> to vector<1x1x128xf32>
    tpu.vector_store %arg10[%c1_28, %c0_29, %c0_30], %47 {strides = array<i32>} : memref<8x2x128xf32, #tpu.memory_space<vmem>>, vector<1x1x128xf32>,
    %c1_31 = arith.constant 1 : index
    %48 = memref.load %arg2[%c1_31] : memref<2xi32, #tpu.memory_space<smem>>
    %c1_i32_32 = arith.constant 1 : i32
    %49 = arith.cmpi sgt, %48, %c1_i32_32 : i32
    %c1_33 = arith.constant 1 : index
    %c1_34 = arith.constant 1 : index
    %50 = memref.load %arg1[%c1_33, %c1_34] : memref<8x2xi32, #tpu.memory_space<smem>>
    %51 = arith.index_cast %50 : i32 to index
    %c0_35 = arith.constant 0 : index
    %52 = vector.load %arg9[%51, %c0_35] : memref<16x128xf32, #tpu.memory_space<vmem>>, vector<1x128xf32>
    %53 = vector.shape_cast %52 : vector<1x128xf32> to vector<128xf32>
    %cst_36 = arith.constant -1.000000e+05 : f32
    %54 = vector.broadcast %cst_36 : f32 to vector<128xf32>
    %55 = arith.select %49, %53, %54 : vector<128xf32>
    %c1_37 = arith.constant 1 : index
    %c1_38 = arith.constant 1 : index
    %c0_39 = arith.constant 0 : index
    %56 = vector.load %arg10[%c1_37, %c1_38, %c0_39] : memref<8x2x128xf32, #tpu.memory_space<vmem>>, vector<1x1x128xf32>
    %57 = vector.shape_cast %56 : vector<1x1x128xf32> to vector<128xf32>
    %58 = vector.shape_cast %55 : vector<128xf32> to vector<1x1x128xf32>
    tpu.vector_store %arg10[%c1_37, %c1_38, %c0_39], %58 {strides = array<i32>} : memref<8x2x128xf32, #tpu.memory_space<vmem>>, vector<1x1x128xf32>,
    %c0_40 = arith.constant 0 : index
    %59 = memref.load %arg2[%c0_40] : memref<2xi32, #tpu.memory_space<smem>>
    %c2_i32 = arith.constant 2 : i32
    %60 = arith.cmpi sgt, %59, %c2_i32 : i32
    %c2 = arith.constant 2 : index
    %c0_41 = arith.constant 0 : index
    %61 = memref.load %arg1[%c2, %c0_41] : memref<8x2xi32, #tpu.memory_space<smem>>
    %62 = arith.index_cast %61 : i32 to index
    %c0_42 = arith.constant 0 : index
    %63 = vector.load %arg9[%62, %c0_42] : memref<16x128xf32, #tpu.memory_space<vmem>>, vector<1x128xf32>
    %64 = vector.shape_cast %63 : vector<1x128xf32> to vector<128xf32>
    %cst_43 = arith.constant -1.000000e+05 : f32
    %65 = vector.broadcast %cst_43 : f32 to vector<128xf32>
    %66 = arith.select %60, %64, %65 : vector<128xf32>
    %c2_44 = arith.constant 2 : index
    %c0_45 = arith.constant 0 : index
    %c0_46 = arith.constant 0 : index
    %67 = vector.load %arg10[%c2_44, %c0_45, %c0_46] : memref<8x2x128xf32, #tpu.memory_space<vmem>>, vector<1x1x128xf32>
    %68 = vector.shape_cast %67 : vector<1x1x128xf32> to vector<128xf32>
    %69 = vector.shape_cast %66 : vector<128xf32> to vector<1x1x128xf32>
    tpu.vector_store %arg10[%c2_44, %c0_45, %c0_46], %69 {strides = array<i32>} : memref<8x2x128xf32, #tpu.memory_space<vmem>>, vector<1x1x128xf32>,
    %c1_47 = arith.constant 1 : index
    %70 = memref.load %arg2[%c1_47] : memref<2xi32, #tpu.memory_space<smem>>
    %c2_i32_48 = arith.constant 2 : i32
    %71 = arith.cmpi sgt, %70, %c2_i32_48 : i32
    %c2_49 = arith.constant 2 : index
    %c1_50 = arith.constant 1 : index
    %72 = memref.load %arg1[%c2_49, %c1_50] : memref<8x2xi32, #tpu.memory_space<smem>>
    %73 = arith.index_cast %72 : i32 to index
    %c0_51 = arith.constant 0 : index
    %74 = vector.load %arg9[%73, %c0_51] : memref<16x128xf32, #tpu.memory_space<vmem>>, vector<1x128xf32>
    %75 = vector.shape_cast %74 : vector<1x128xf32> to vector<128xf32>
    %cst_52 = arith.constant -1.000000e+05 : f32
    %76 = vector.broadcast %cst_52 : f32 to vector<128xf32>
    %77 = arith.select %71, %75, %76 : vector<128xf32>
    %c2_53 = arith.constant 2 : index
    %c1_54 = arith.constant 1 : index
    %c0_55 = arith.constant 0 : index
    %78 = vector.load %arg10[%c2_53, %c1_54, %c0_55] : memref<8x2x128xf32, #tpu.memory_space<vmem>>, vector<1x1x128xf32>
    %79 = vector.shape_cast %78 : vector<1x1x128xf32> to vector<128xf32>
    %80 = vector.shape_cast %77 : vector<128xf32> to vector<1x1x128xf32>
    tpu.vector_store %arg10[%c2_53, %c1_54, %c0_55], %80 {strides = array<i32>} : memref<8x2x128xf32, #tpu.memory_space<vmem>>, vector<1x1x128xf32>,
    %c0_56 = arith.constant 0 : index
    %81 = memref.load %arg2[%c0_56] : memref<2xi32, #tpu.memory_space<smem>>
    %c3_i32 = arith.constant 3 : i32
    %82 = arith.cmpi sgt, %81, %c3_i32 : i32
    %c3 = arith.constant 3 : index
    %c0_57 = arith.constant 0 : index
    %83 = memref.load %arg1[%c3, %c0_57] : memref<8x2xi32, #tpu.memory_space<smem>>
    %84 = arith.index_cast %83 : i32 to index
    %c0_58 = arith.constant 0 : index
    %85 = vector.load %arg9[%84, %c0_58] : memref<16x128xf32, #tpu.memory_space<vmem>>, vector<1x128xf32>
    %86 = vector.shape_cast %85 : vector<1x128xf32> to vector<128xf32>
    %cst_59 = arith.constant -1.000000e+05 : f32
    %87 = vector.broadcast %cst_59 : f32 to vector<128xf32>
    %88 = arith.select %82, %86, %87 : vector<128xf32>
    %c3_60 = arith.constant 3 : index
    %c0_61 = arith.constant 0 : index
    %c0_62 = arith.constant 0 : index
    %89 = vector.load %arg10[%c3_60, %c0_61, %c0_62] : memref<8x2x128xf32, #tpu.memory_space<vmem>>, vector<1x1x128xf32>
    %90 = vector.shape_cast %89 : vector<1x1x128xf32> to vector<128xf32>
    %91 = vector.shape_cast %88 : vector<128xf32> to vector<1x1x128xf32>
    tpu.vector_store %arg10[%c3_60, %c0_61, %c0_62], %91 {strides = array<i32>} : memref<8x2x128xf32, #tpu.memory_space<vmem>>, vector<1x1x128xf32>,
    %c1_63 = arith.constant 1 : index
    %92 = memref.load %arg2[%c1_63] : memref<2xi32, #tpu.memory_space<smem>>
    %c3_i32_64 = arith.constant 3 : i32
    %93 = arith.cmpi sgt, %92, %c3_i32_64 : i32
    %c3_65 = arith.constant 3 : index
    %c1_66 = arith.constant 1 : index
    %94 = memref.load %arg1[%c3_65, %c1_66] : memref<8x2xi32, #tpu.memory_space<smem>>
    %95 = arith.index_cast %94 : i32 to index
    %c0_67 = arith.constant 0 : index
    %96 = vector.load %arg9[%95, %c0_67] : memref<16x128xf32, #tpu.memory_space<vmem>>, vector<1x128xf32>
    %97 = vector.shape_cast %96 : vector<1x128xf32> to vector<128xf32>
    %cst_68 = arith.constant -1.000000e+05 : f32
    %98 = vector.broadcast %cst_68 : f32 to vector<128xf32>
    %99 = arith.select %93, %97, %98 : vector<128xf32>
    %c3_69 = arith.constant 3 : index
    %c1_70 = arith.constant 1 : index
    %c0_71 = arith.constant 0 : index
    %100 = vector.load %arg10[%c3_69, %c1_70, %c0_71] : memref<8x2x128xf32, #tpu.memory_space<vmem>>, vector<1x1x128xf32>
    %101 = vector.shape_cast %100 : vector<1x1x128xf32> to vector<128xf32>
    %102 = vector.shape_cast %99 : vector<128xf32> to vector<1x1x128xf32>
    tpu.vector_store %arg10[%c3_69, %c1_70, %c0_71], %102 {strides = array<i32>} : memref<8x2x128xf32, #tpu.memory_space<vmem>>, vector<1x1x128xf32>,
    %c0_72 = arith.constant 0 : index
    %103 = memref.load %arg2[%c0_72] : memref<2xi32, #tpu.memory_space<smem>>
    %c4_i32 = arith.constant 4 : i32
    %104 = arith.cmpi sgt, %103, %c4_i32 : i32
    %c4 = arith.constant 4 : index
    %c0_73 = arith.constant 0 : index
    %105 = memref.load %arg1[%c4, %c0_73] : memref<8x2xi32, #tpu.memory_space<smem>>
    %106 = arith.index_cast %105 : i32 to index
    %c0_74 = arith.constant 0 : index
    %107 = vector.load %arg9[%106, %c0_74] : memref<16x128xf32, #tpu.memory_space<vmem>>, vector<1x128xf32>
    %108 = vector.shape_cast %107 : vector<1x128xf32> to vector<128xf32>
    %cst_75 = arith.constant -1.000000e+05 : f32
    %109 = vector.broadcast %cst_75 : f32 to vector<128xf32>
    %110 = arith.select %104, %108, %109 : vector<128xf32>
    %c4_76 = arith.constant 4 : index
    %c0_77 = arith.constant 0 : index
    %c0_78 = arith.constant 0 : index
    %111 = vector.load %arg10[%c4_76, %c0_77, %c0_78] : memref<8x2x128xf32, #tpu.memory_space<vmem>>, vector<1x1x128xf32>
    %112 = vector.shape_cast %111 : vector<1x1x128xf32> to vector<128xf32>
    %113 = vector.shape_cast %110 : vector<128xf32> to vector<1x1x128xf32>
    tpu.vector_store %arg10[%c4_76, %c0_77, %c0_78], %113 {strides = array<i32>} : memref<8x2x128xf32, #tpu.memory_space<vmem>>, vector<1x1x128xf32>,
    %c1_79 = arith.constant 1 : index
    %114 = memref.load %arg2[%c1_79] : memref<2xi32, #tpu.memory_space<smem>>
    %c4_i32_80 = arith.constant 4 : i32
    %115 = arith.cmpi sgt, %114, %c4_i32_80 : i32
    %c4_81 = arith.constant 4 : index
    %c1_82 = arith.constant 1 : index
    %116 = memref.load %arg1[%c4_81, %c1_82] : memref<8x2xi32, #tpu.memory_space<smem>>
    %117 = arith.index_cast %116 : i32 to index
    %c0_83 = arith.constant 0 : index
    %118 = vector.load %arg9[%117, %c0_83] : memref<16x128xf32, #tpu.memory_space<vmem>>, vector<1x128xf32>
    %119 = vector.shape_cast %118 : vector<1x128xf32> to vector<128xf32>
    %cst_84 = arith.constant -1.000000e+05 : f32
    %120 = vector.broadcast %cst_84 : f32 to vector<128xf32>
    %121 = arith.select %115, %119, %120 : vector<128xf32>
    %c4_85 = arith.constant 4 : index
    %c1_86 = arith.constant 1 : index
    %c0_87 = arith.constant 0 : index
    %122 = vector.load %arg10[%c4_85, %c1_86, %c0_87] : memref<8x2x128xf32, #tpu.memory_space<vmem>>, vector<1x1x128xf32>
    %123 = vector.shape_cast %122 : vector<1x1x128xf32> to vector<128xf32>
    %124 = vector.shape_cast %121 : vector<128xf32> to vector<1x1x128xf32>
    tpu.vector_store %arg10[%c4_85, %c1_86, %c0_87], %124 {strides = array<i32>} : memref<8x2x128xf32, #tpu.memory_space<vmem>>, vector<1x1x128xf32>,
    %c0_88 = arith.constant 0 : index
    %125 = memref.load %arg2[%c0_88] : memref<2xi32, #tpu.memory_space<smem>>
    %c5_i32 = arith.constant 5 : i32
    %126 = arith.cmpi sgt, %125, %c5_i32 : i32
    %c5 = arith.constant 5 : index
    %c0_89 = arith.constant 0 : index
    %127 = memref.load %arg1[%c5, %c0_89] : memref<8x2xi32, #tpu.memory_space<smem>>
    %128 = arith.index_cast %127 : i32 to index
    %c0_90 = arith.constant 0 : index
    %129 = vector.load %arg9[%128, %c0_90] : memref<16x128xf32, #tpu.memory_space<vmem>>, vector<1x128xf32>
    %130 = vector.shape_cast %129 : vector<1x128xf32> to vector<128xf32>
    %cst_91 = arith.constant -1.000000e+05 : f32
    %131 = vector.broadcast %cst_91 : f32 to vector<128xf32>
    %132 = arith.select %126, %130, %131 : vector<128xf32>
    %c5_92 = arith.constant 5 : index
    %c0_93 = arith.constant 0 : index
    %c0_94 = arith.constant 0 : index
    %133 = vector.load %arg10[%c5_92, %c0_93, %c0_94] : memref<8x2x128xf32, #tpu.memory_space<vmem>>, vector<1x1x128xf32>
    %134 = vector.shape_cast %133 : vector<1x1x128xf32> to vector<128xf32>
    %135 = vector.shape_cast %132 : vector<128xf32> to vector<1x1x128xf32>
    tpu.vector_store %arg10[%c5_92, %c0_93, %c0_94], %135 {strides = array<i32>} : memref<8x2x128xf32, #tpu.memory_space<vmem>>, vector<1x1x128xf32>,
    %c1_95 = arith.constant 1 : index
    %136 = memref.load %arg2[%c1_95] : memref<2xi32, #tpu.memory_space<smem>>
    %c5_i32_96 = arith.constant 5 : i32
    %137 = arith.cmpi sgt, %136, %c5_i32_96 : i32
    %c5_97 = arith.constant 5 : index
    %c1_98 = arith.constant 1 : index
    %138 = memref.load %arg1[%c5_97, %c1_98] : memref<8x2xi32, #tpu.memory_space<smem>>
    %139 = arith.index_cast %138 : i32 to index
    %c0_99 = arith.constant 0 : index
    %140 = vector.load %arg9[%139, %c0_99] : memref<16x128xf32, #tpu.memory_space<vmem>>, vector<1x128xf32>
    %141 = vector.shape_cast %140 : vector<1x128xf32> to vector<128xf32>
    %cst_100 = arith.constant -1.000000e+05 : f32
    %142 = vector.broadcast %cst_100 : f32 to vector<128xf32>
    %143 = arith.select %137, %141, %142 : vector<128xf32>
    %c5_101 = arith.constant 5 : index
    %c1_102 = arith.constant 1 : index
    %c0_103 = arith.constant 0 : index
    %144 = vector.load %arg10[%c5_101, %c1_102, %c0_103] : memref<8x2x128xf32, #tpu.memory_space<vmem>>, vector<1x1x128xf32>
    %145 = vector.shape_cast %144 : vector<1x1x128xf32> to vector<128xf32>
    %146 = vector.shape_cast %143 : vector<128xf32> to vector<1x1x128xf32>
    tpu.vector_store %arg10[%c5_101, %c1_102, %c0_103], %146 {strides = array<i32>} : memref<8x2x128xf32, #tpu.memory_space<vmem>>, vector<1x1x128xf32>,
    %c0_104 = arith.constant 0 : index
    %147 = memref.load %arg2[%c0_104] : memref<2xi32, #tpu.memory_space<smem>>
    %c6_i32 = arith.constant 6 : i32
    %148 = arith.cmpi sgt, %147, %c6_i32 : i32
    %c6 = arith.constant 6 : index
    %c0_105 = arith.constant 0 : index
    %149 = memref.load %arg1[%c6, %c0_105] : memref<8x2xi32, #tpu.memory_space<smem>>
    %150 = arith.index_cast %149 : i32 to index
    %c0_106 = arith.constant 0 : index
    %151 = vector.load %arg9[%150, %c0_106] : memref<16x128xf32, #tpu.memory_space<vmem>>, vector<1x128xf32>
    %152 = vector.shape_cast %151 : vector<1x128xf32> to vector<128xf32>
    %cst_107 = arith.constant -1.000000e+05 : f32
    %153 = vector.broadcast %cst_107 : f32 to vector<128xf32>
    %154 = arith.select %148, %152, %153 : vector<128xf32>
    %c6_108 = arith.constant 6 : index
    %c0_109 = arith.constant 0 : index
    %c0_110 = arith.constant 0 : index
    %155 = vector.load %arg10[%c6_108, %c0_109, %c0_110] : memref<8x2x128xf32, #tpu.memory_space<vmem>>, vector<1x1x128xf32>
    %156 = vector.shape_cast %155 : vector<1x1x128xf32> to vector<128xf32>
    %157 = vector.shape_cast %154 : vector<128xf32> to vector<1x1x128xf32>
    tpu.vector_store %arg10[%c6_108, %c0_109, %c0_110], %157 {strides = array<i32>} : memref<8x2x128xf32, #tpu.memory_space<vmem>>, vector<1x1x128xf32>,
    %c1_111 = arith.constant 1 : index
    %158 = memref.load %arg2[%c1_111] : memref<2xi32, #tpu.memory_space<smem>>
    %c6_i32_112 = arith.constant 6 : i32
    %159 = arith.cmpi sgt, %158, %c6_i32_112 : i32
    %c6_113 = arith.constant 6 : index
    %c1_114 = arith.constant 1 : index
    %160 = memref.load %arg1[%c6_113, %c1_114] : memref<8x2xi32, #tpu.memory_space<smem>>
    %161 = arith.index_cast %160 : i32 to index
    %c0_115 = arith.constant 0 : index
    %162 = vector.load %arg9[%161, %c0_115] : memref<16x128xf32, #tpu.memory_space<vmem>>, vector<1x128xf32>
    %163 = vector.shape_cast %162 : vector<1x128xf32> to vector<128xf32>
    %cst_116 = arith.constant -1.000000e+05 : f32
    %164 = vector.broadcast %cst_116 : f32 to vector<128xf32>
    %165 = arith.select %159, %163, %164 : vector<128xf32>
    %c6_117 = arith.constant 6 : index
    %c1_118 = arith.constant 1 : index
    %c0_119 = arith.constant 0 : index
    %166 = vector.load %arg10[%c6_117, %c1_118, %c0_119] : memref<8x2x128xf32, #tpu.memory_space<vmem>>, vector<1x1x128xf32>
    %167 = vector.shape_cast %166 : vector<1x1x128xf32> to vector<128xf32>
    %168 = vector.shape_cast %165 : vector<128xf32> to vector<1x1x128xf32>
    tpu.vector_store %arg10[%c6_117, %c1_118, %c0_119], %168 {strides = array<i32>} : memref<8x2x128xf32, #tpu.memory_space<vmem>>, vector<1x1x128xf32>,
    %c0_120 = arith.constant 0 : index
    %169 = memref.load %arg2[%c0_120] : memref<2xi32, #tpu.memory_space<smem>>
    %c7_i32 = arith.constant 7 : i32
    %170 = arith.cmpi sgt, %169, %c7_i32 : i32
    %c7 = arith.constant 7 : index
    %c0_121 = arith.constant 0 : index
    %171 = memref.load %arg1[%c7, %c0_121] : memref<8x2xi32, #tpu.memory_space<smem>>
    %172 = arith.index_cast %171 : i32 to index
    %c0_122 = arith.constant 0 : index
    %173 = vector.load %arg9[%172, %c0_122] : memref<16x128xf32, #tpu.memory_space<vmem>>, vector<1x128xf32>
    %174 = vector.shape_cast %173 : vector<1x128xf32> to vector<128xf32>
    %cst_123 = arith.constant -1.000000e+05 : f32
    %175 = vector.broadcast %cst_123 : f32 to vector<128xf32>
    %176 = arith.select %170, %174, %175 : vector<128xf32>
    %c7_124 = arith.constant 7 : index
    %c0_125 = arith.constant 0 : index
    %c0_126 = arith.constant 0 : index
    %177 = vector.load %arg10[%c7_124, %c0_125, %c0_126] : memref<8x2x128xf32, #tpu.memory_space<vmem>>, vector<1x1x128xf32>
    %178 = vector.shape_cast %177 : vector<1x1x128xf32> to vector<128xf32>
    %179 = vector.shape_cast %176 : vector<128xf32> to vector<1x1x128xf32>
    tpu.vector_store %arg10[%c7_124, %c0_125, %c0_126], %179 {strides = array<i32>} : memref<8x2x128xf32, #tpu.memory_space<vmem>>, vector<1x1x128xf32>,
    %c1_127 = arith.constant 1 : index
    %180 = memref.load %arg2[%c1_127] : memref<2xi32, #tpu.memory_space<smem>>
    %c7_i32_128 = arith.constant 7 : i32
    %181 = arith.cmpi sgt, %180, %c7_i32_128 : i32
    %c7_129 = arith.constant 7 : index
    %c1_130 = arith.constant 1 : index
    %182 = memref.load %arg1[%c7_129, %c1_130] : memref<8x2xi32, #tpu.memory_space<smem>>
    %183 = arith.index_cast %182 : i32 to index
    %c0_131 = arith.constant 0 : index
    %184 = vector.load %arg9[%183, %c0_131] : memref<16x128xf32, #tpu.memory_space<vmem>>, vector<1x128xf32>
    %185 = vector.shape_cast %184 : vector<1x128xf32> to vector<128xf32>
    %cst_132 = arith.constant -1.000000e+05 : f32
    %186 = vector.broadcast %cst_132 : f32 to vector<128xf32>
    %187 = arith.select %181, %185, %186 : vector<128xf32>
    %c7_133 = arith.constant 7 : index
    %c1_134 = arith.constant 1 : index
    %c0_135 = arith.constant 0 : index
    %188 = vector.load %arg10[%c7_133, %c1_134, %c0_135] : memref<8x2x128xf32, #tpu.memory_space<vmem>>, vector<1x1x128xf32>
    %189 = vector.shape_cast %188 : vector<1x1x128xf32> to vector<128xf32>
    %190 = vector.shape_cast %187 : vector<128xf32> to vector<1x1x128xf32>
    tpu.vector_store %arg10[%c7_133, %c1_134, %c0_135], %190 {strides = array<i32>} : memref<8x2x128xf32, #tpu.memory_space<vmem>>, vector<1x1x128xf32>,
    %c0_136 = arith.constant 0 : index
    %c0_137 = arith.constant 0 : index
    %c0_138 = arith.constant 0 : index
    %191 = vector.load %arg10[%c0_136, %c0_137, %c0_138] : memref<8x2x128xf32, #tpu.memory_space<vmem>>, vector<8x2x128xf32>
    %192 = arith.negf %191 : vector<8x2x128xf32>
    %193 = math.exp %192 : vector<8x2x128xf32>
    %cst_139 = arith.constant 1.000000e+00 : f32
    %194 = vector.broadcast %cst_139 : f32 to vector<8x2x128xf32>
    %195 = arith.addf %194, %193 : vector<8x2x128xf32>
    %196 = arith.divf %194, %195 : vector<8x2x128xf32>
    %197 = vector.extract_strided_slice %0 {offsets = [2, 0], sizes = [1, 128], strides = [1, 1]} : vector<8x128xf32> to vector<1x128xf32>
    %198 = vector.shape_cast %197 : vector<1x128xf32> to vector<128xf32>
    %199 = vector.extract_strided_slice %0 {offsets = [3, 0], sizes = [1, 128], strides = [1, 1]} : vector<8x128xf32> to vector<1x128xf32>
    %200 = vector.shape_cast %199 : vector<1x128xf32> to vector<128xf32>
    %cst_140 = arith.constant 0.000000e+00 : f32
    %201 = vector.broadcast %cst_140 : f32 to vector<2x128xf32>
    %cst_141 = arith.constant 0.000000e+00 : f32
    %202 = vector.broadcast %cst_141 : f32 to vector<2x128xf32>
    %c1_i32_142 = arith.constant 1 : i32
    %203 = tpu.dynamic_rotate %201 by %c1_i32_142 dim 1 : vector<2x128xf32>, i32 -> vector<2x128xf32>
    %204 = vector.shape_cast %200 : vector<128xf32> to vector<1x128xf32>
    %205 = vector.broadcast %204 : vector<1x128xf32> to vector<2x128xf32>
    %206 = arith.mulf %203, %205 : vector<2x128xf32>
    %207 = vector.shape_cast %198 : vector<128xf32> to vector<1x128xf32>
    %208 = vector.broadcast %207 : vector<1x128xf32> to vector<2x128xf32>
    %209 = arith.addf %206, %208 : vector<2x128xf32>
    %210 = vector.extract_strided_slice %196 {offsets = [0, 0, 0], sizes = [1, 2, 128], strides = [1, 1, 1]} : vector<8x2x128xf32> to vector<1x2x128xf32>
    %211 = vector.shape_cast %210 : vector<1x2x128xf32> to vector<2x128xf32>
    %212 = arith.mulf %209, %211 : vector<2x128xf32>
    %213 = arith.maximumf %202, %212 : vector<2x128xf32>
    %c1_i32_143 = arith.constant 1 : i32
    %214 = tpu.dynamic_rotate %212 by %c1_i32_143 dim 1 : vector<2x128xf32>, i32 -> vector<2x128xf32>
    %215 = vector.shape_cast %200 : vector<128xf32> to vector<1x128xf32>
    %216 = vector.broadcast %215 : vector<1x128xf32> to vector<2x128xf32>
    %217 = arith.mulf %214, %216 : vector<2x128xf32>
    %218 = vector.shape_cast %198 : vector<128xf32> to vector<1x128xf32>
    %219 = vector.broadcast %218 : vector<1x128xf32> to vector<2x128xf32>
    %220 = arith.addf %217, %219 : vector<2x128xf32>
    %221 = vector.extract_strided_slice %196 {offsets = [1, 0, 0], sizes = [1, 2, 128], strides = [1, 1, 1]} : vector<8x2x128xf32> to vector<1x2x128xf32>
    %222 = vector.shape_cast %221 : vector<1x2x128xf32> to vector<2x128xf32>
    %223 = arith.mulf %220, %222 : vector<2x128xf32>
    %224 = arith.maximumf %213, %223 : vector<2x128xf32>
    %c1_i32_144 = arith.constant 1 : i32
    %225 = tpu.dynamic_rotate %223 by %c1_i32_144 dim 1 : vector<2x128xf32>, i32 -> vector<2x128xf32>
    %226 = vector.shape_cast %200 : vector<128xf32> to vector<1x128xf32>
    %227 = vector.broadcast %226 : vector<1x128xf32> to vector<2x128xf32>
    %228 = arith.mulf %225, %227 : vector<2x128xf32>
    %229 = vector.shape_cast %198 : vector<128xf32> to vector<1x128xf32>
    %230 = vector.broadcast %229 : vector<1x128xf32> to vector<2x128xf32>
    %231 = arith.addf %228, %230 : vector<2x128xf32>
    %232 = vector.extract_strided_slice %196 {offsets = [2, 0, 0], sizes = [1, 2, 128], strides = [1, 1, 1]} : vector<8x2x128xf32> to vector<1x2x128xf32>
    %233 = vector.shape_cast %232 : vector<1x2x128xf32> to vector<2x128xf32>
    %234 = arith.mulf %231, %233 : vector<2x128xf32>
    %235 = arith.maximumf %224, %234 : vector<2x128xf32>
    %c1_i32_145 = arith.constant 1 : i32
    %236 = tpu.dynamic_rotate %234 by %c1_i32_145 dim 1 : vector<2x128xf32>, i32 -> vector<2x128xf32>
    %237 = vector.shape_cast %200 : vector<128xf32> to vector<1x128xf32>
    %238 = vector.broadcast %237 : vector<1x128xf32> to vector<2x128xf32>
    %239 = arith.mulf %236, %238 : vector<2x128xf32>
    %240 = vector.shape_cast %198 : vector<128xf32> to vector<1x128xf32>
    %241 = vector.broadcast %240 : vector<1x128xf32> to vector<2x128xf32>
    %242 = arith.addf %239, %241 : vector<2x128xf32>
    %243 = vector.extract_strided_slice %196 {offsets = [3, 0, 0], sizes = [1, 2, 128], strides = [1, 1, 1]} : vector<8x2x128xf32> to vector<1x2x128xf32>
    %244 = vector.shape_cast %243 : vector<1x2x128xf32> to vector<2x128xf32>
    %245 = arith.mulf %242, %244 : vector<2x128xf32>
    %246 = arith.maximumf %235, %245 : vector<2x128xf32>
    %c1_i32_146 = arith.constant 1 : i32
    %247 = tpu.dynamic_rotate %245 by %c1_i32_146 dim 1 : vector<2x128xf32>, i32 -> vector<2x128xf32>
    %248 = vector.shape_cast %200 : vector<128xf32> to vector<1x128xf32>
    %249 = vector.broadcast %248 : vector<1x128xf32> to vector<2x128xf32>
    %250 = arith.mulf %247, %249 : vector<2x128xf32>
    %251 = vector.shape_cast %198 : vector<128xf32> to vector<1x128xf32>
    %252 = vector.broadcast %251 : vector<1x128xf32> to vector<2x128xf32>
    %253 = arith.addf %250, %252 : vector<2x128xf32>
    %254 = vector.extract_strided_slice %196 {offsets = [4, 0, 0], sizes = [1, 2, 128], strides = [1, 1, 1]} : vector<8x2x128xf32> to vector<1x2x128xf32>
    %255 = vector.shape_cast %254 : vector<1x2x128xf32> to vector<2x128xf32>
    %256 = arith.mulf %253, %255 : vector<2x128xf32>
    %257 = arith.maximumf %246, %256 : vector<2x128xf32>
    %c1_i32_147 = arith.constant 1 : i32
    %258 = tpu.dynamic_rotate %256 by %c1_i32_147 dim 1 : vector<2x128xf32>, i32 -> vector<2x128xf32>
    %259 = vector.shape_cast %200 : vector<128xf32> to vector<1x128xf32>
    %260 = vector.broadcast %259 : vector<1x128xf32> to vector<2x128xf32>
    %261 = arith.mulf %258, %260 : vector<2x128xf32>
    %262 = vector.shape_cast %198 : vector<128xf32> to vector<1x128xf32>
    %263 = vector.broadcast %262 : vector<1x128xf32> to vector<2x128xf32>
    %264 = arith.addf %261, %263 : vector<2x128xf32>
    %265 = vector.extract_strided_slice %196 {offsets = [5, 0, 0], sizes = [1, 2, 128], strides = [1, 1, 1]} : vector<8x2x128xf32> to vector<1x2x128xf32>
    %266 = vector.shape_cast %265 : vector<1x2x128xf32> to vector<2x128xf32>
    %267 = arith.mulf %264, %266 : vector<2x128xf32>
    %268 = arith.maximumf %257, %267 : vector<2x128xf32>
    %c1_i32_148 = arith.constant 1 : i32
    %269 = tpu.dynamic_rotate %267 by %c1_i32_148 dim 1 : vector<2x128xf32>, i32 -> vector<2x128xf32>
    %270 = vector.shape_cast %200 : vector<128xf32> to vector<1x128xf32>
    %271 = vector.broadcast %270 : vector<1x128xf32> to vector<2x128xf32>
    %272 = arith.mulf %269, %271 : vector<2x128xf32>
    %273 = vector.shape_cast %198 : vector<128xf32> to vector<1x128xf32>
    %274 = vector.broadcast %273 : vector<1x128xf32> to vector<2x128xf32>
    %275 = arith.addf %272, %274 : vector<2x128xf32>
    %276 = vector.extract_strided_slice %196 {offsets = [6, 0, 0], sizes = [1, 2, 128], strides = [1, 1, 1]} : vector<8x2x128xf32> to vector<1x2x128xf32>
    %277 = vector.shape_cast %276 : vector<1x2x128xf32> to vector<2x128xf32>
    %278 = arith.mulf %275, %277 : vector<2x128xf32>
    %279 = arith.maximumf %268, %278 : vector<2x128xf32>
    %c1_i32_149 = arith.constant 1 : i32
    %280 = tpu.dynamic_rotate %278 by %c1_i32_149 dim 1 : vector<2x128xf32>, i32 -> vector<2x128xf32>
    %281 = vector.shape_cast %200 : vector<128xf32> to vector<1x128xf32>
    %282 = vector.broadcast %281 : vector<1x128xf32> to vector<2x128xf32>
    %283 = arith.mulf %280, %282 : vector<2x128xf32>
    %284 = vector.shape_cast %198 : vector<128xf32> to vector<1x128xf32>
    %285 = vector.broadcast %284 : vector<1x128xf32> to vector<2x128xf32>
    %286 = arith.addf %283, %285 : vector<2x128xf32>
    %287 = vector.extract_strided_slice %196 {offsets = [7, 0, 0], sizes = [1, 2, 128], strides = [1, 1, 1]} : vector<8x2x128xf32> to vector<1x2x128xf32>
    %288 = vector.shape_cast %287 : vector<1x2x128xf32> to vector<2x128xf32>
    %289 = arith.mulf %286, %288 : vector<2x128xf32>
    %290 = arith.maximumf %279, %289 : vector<2x128xf32>
    %c0_150 = arith.constant 0 : index
    %c0_151 = arith.constant 0 : index
    %291 = vector.load %arg6[%c0_150, %c0_151] : memref<128x128xf32, #tpu.memory_space<vmem>>, vector<128x128xf32>
    %cst_152 = arith.constant dense<0.000000e+00> : vector<2x128xf32>
    %292 = tpu.matmul %290, %291, %cst_152 {dimension_numbers = #tpu.dot_dimension_numbers<[1], [0], [0], [1], [0, 0, 1, 1], [], []>} : vector<2x128xf32>, vector<128x128xf32>, vector<2x128xf32> -> vector<2x128xf32>
    %293 = vector.extract_strided_slice %0 {offsets = [4, 0], sizes = [1, 128], strides = [1, 1]} : vector<8x128xf32> to vector<1x128xf32>
    %294 = vector.shape_cast %293 : vector<1x128xf32> to vector<128xf32>
    %cst_153 = arith.constant dense<0.000000e+00> : vector<2xf32>
    %295 = vector.multi_reduction <add>, %292, %cst_153 [1] : vector<2x128xf32> to vector<2xf32>
    %296 = vector.shape_cast %295 : vector<2xf32> to vector<2x1xf32>
    %cst_154 = arith.constant 0.0833333358 : f32
    %297 = vector.broadcast %cst_154 : f32 to vector<2x1xf32>
    %298 = arith.mulf %296, %297 : vector<2x1xf32>
    %299 = vector.broadcast %298 : vector<2x1xf32> to vector<2x128xf32>
    %300 = arith.subf %292, %299 : vector<2x128xf32>
    %301 = vector.shape_cast %294 : vector<128xf32> to vector<1x128xf32>
    %302 = vector.broadcast %301 : vector<1x128xf32> to vector<2x128xf32>
    %303 = arith.mulf %300, %302 : vector<2x128xf32>
    %304 = arith.mulf %303, %303 : vector<2x128xf32>
    %cst_155 = arith.constant dense<0.000000e+00> : vector<2xf32>
    %305 = vector.multi_reduction <add>, %304, %cst_155 [1] : vector<2x128xf32> to vector<2xf32>
    %306 = vector.shape_cast %305 : vector<2xf32> to vector<2x1xf32>
    %cst_156 = arith.constant 0.0833333358 : f32
    %307 = vector.broadcast %cst_156 : f32 to vector<2x1xf32>
    %308 = arith.mulf %306, %307 : vector<2x1xf32>
    %cst_157 = arith.constant 9.99999974E-6 : f32
    %309 = vector.broadcast %cst_157 : f32 to vector<2x1xf32>
    %310 = arith.addf %308, %309 : vector<2x1xf32>
    %311 = math.rsqrt %310 : vector<2x1xf32>
    %312 = vector.broadcast %311 : vector<2x1xf32> to vector<2x128xf32>
    %313 = arith.mulf %303, %312 : vector<2x128xf32>
    %cst_158 = arith.constant 0.000000e+00 : f32
    %314 = vector.broadcast %cst_158 : f32 to vector<2x128xf32>
    %315 = arith.cmpf ogt, %313, %314 : vector<2x128xf32>
    %316 = arith.extui %315 : vector<2x128xi1> to vector<2x128xi32>
    %317 = arith.sitofp %316 : vector<2x128xi32> to vector<2x128xf32>
    %318 = vector.shape_cast %294 : vector<128xf32> to vector<1x128xf32>
    %319 = vector.broadcast %318 : vector<1x128xf32> to vector<2x128xf32>
    %320 = arith.mulf %317, %319 : vector<2x128xf32>
    %c0_159 = arith.constant 0 : index
    %c0_160 = arith.constant 0 : index
    %321 = vector.load %arg7[%c0_159, %c0_160] : memref<128x128xf32, #tpu.memory_space<vmem>>, vector<128x128xf32>
    %cst_161 = arith.constant dense<0.000000e+00> : vector<2x128xf32>
    %322 = tpu.matmul %320, %321, %cst_161 {dimension_numbers = #tpu.dot_dimension_numbers<[1], [0], [0], [1], [0, 0, 1, 1], [], []>} : vector<2x128xf32>, vector<128x128xf32>, vector<2x128xf32> -> vector<2x128xf32>
    %323 = vector.extract_strided_slice %0 {offsets = [5, 0], sizes = [1, 128], strides = [1, 1]} : vector<8x128xf32> to vector<1x128xf32>
    %324 = vector.shape_cast %323 : vector<1x128xf32> to vector<128xf32>
    %325 = vector.shape_cast %324 : vector<128xf32> to vector<1x128xf32>
    %326 = vector.broadcast %325 : vector<1x128xf32> to vector<2x128xf32>
    %327 = arith.addf %322, %326 : vector<2x128xf32>
    %328 = arith.addf %292, %327 : vector<2x128xf32>
    %c0_162 = arith.constant 0 : index
    %c0_163 = arith.constant 0 : index
    %329 = vector.load %arg8[%c0_162, %c0_163] : memref<2x128xf32, #tpu.memory_space<vmem>>, vector<2x128xf32>
    tpu.vector_store %arg8[%c0_162, %c0_163], %328 {strides = array<i32>} : memref<2x128xf32, #tpu.memory_space<vmem>>, vector<2x128xf32>,
    return
  }
  func.func @transform_0(%arg0: i32, %arg1: memref<8x2xi32, #tpu.memory_space<smem>>, %arg2: memref<2xi32, #tpu.memory_space<smem>>) -> (i32, i32) {
    %c0_i32 = arith.constant 0 : i32
    %c0_i32_0 = arith.constant 0 : i32
    %c0_i32_1 = arith.constant 0 : i32
    return %c0_i32, %c0_i32_0 : i32, i32
  }
  func.func @transform_1(%arg0: i32, %arg1: memref<8x2xi32, #tpu.memory_space<smem>>, %arg2: memref<2xi32, #tpu.memory_space<smem>>) -> (i32, i32) {
    %c0_i32 = arith.constant 0 : i32
    %c0_i32_0 = arith.constant 0 : i32
    %c0_i32_1 = arith.constant 0 : i32
    return %c0_i32, %c0_i32_0 : i32, i32
  }
  func.func @transform_2(%arg0: i32, %arg1: memref<8x2xi32, #tpu.memory_space<smem>>, %arg2: memref<2xi32, #tpu.memory_space<smem>>) -> (i32, i32) {
    %c0_i32 = arith.constant 0 : i32
    %c0_i32_0 = arith.constant 0 : i32
    %c0_i32_1 = arith.constant 0 : i32
    return %c0_i32, %c0_i32_0 : i32, i32
  }
  func.func @transform_3(%arg0: i32, %arg1: memref<8x2xi32, #tpu.memory_space<smem>>, %arg2: memref<2xi32, #tpu.memory_space<smem>>) -> (i32, i32) {
    %c0_i32 = arith.constant 0 : i32
    %c0_i32_0 = arith.constant 0 : i32
    %c0_i32_1 = arith.constant 0 : i32
    return %c0_i32, %c0_i32_0 : i32, i32
  }
  func.func @transform_4(%arg0: i32, %arg1: memref<8x2xi32, #tpu.memory_space<smem>>, %arg2: memref<2xi32, #tpu.memory_space<smem>>) -> (i32, i32) {
    %c0_i32 = arith.constant 0 : i32
    %c0_i32_0 = arith.constant 0 : i32
    %c0_i32_1 = arith.constant 0 : i32
    return %c0_i32, %c0_i32_0 : i32, i32
  }
  func.func @transform_5(%arg0: i32, %arg1: memref<8x2xi32, #tpu.memory_space<smem>>, %arg2: memref<2xi32, #tpu.memory_space<smem>>) -> (i32, i32) {
    %c0_i32 = arith.constant 0 : i32
    %c0_i32_0 = arith.constant 0 : i32
    %c0_i32_1 = arith.constant 0 : i32
    return %c0_i32, %c0_i32_0 : i32, i32
  }
}

</mosaic_0001>

<bundles_post_ra>
// kernel: tpu_custom_call.1
= control target key start
LH: loop header
LB: loop body
LE: loop exit
PB: predicated region body
PF: predicated region fallthrough
CT: control target
= control target key end

     0   :  { %s891_s30 = smov [#allocation5]   ;;  %s892_s8 = smov [#allocation6]   ;;  %s1218_s0 = inlined_call_operand.vmem [shape: s32[8,2], index: 0, kind: input, shape index: {}]   ;;  %s1219_s2 = inlined_call_operand.hbm [shape: f32[16,32], index: 2, kind: input, shape index: {}]   ;;  %s1220_s3 = inlined_call_operand.hbm [shape: f32[32,128], index: 3, kind: input, shape index: {}]   ;;  %s1221_s4 = inlined_call_operand.vmem [shape: f32[8,128], index: 4, kind: input, shape index: {}]   ;;  %s1222_s5 = inlined_call_operand.hbm [shape: f32[128,128], index: 5, kind: input, shape index: {}]   ;;  %s1223_s6 = inlined_call_operand.hbm [shape: f32[128,128], index: 6, kind: input, shape index: {}]   ;;  %s1224_s7 = inlined_call_operand.hbm [shape: f32[2,128], index: 7, kind: output, shape index: {}]   ;;  %s1225_s1 = inlined_call_operand.vmem [shape: s32[2], index: 1, kind: input, shape index: {}]  }
   0x1   :  { %1228 = sst [smem:[#allocation23_spill]] %s1224_s7  ;;  %s13_s26 = sshll.u32 %s1218_s0, 4  ;;  %s14_s26 = int_to_ptr.vmem [resolvable:$true] %s13_s26 }
   0x2   :  { %s18_s29 = sshll.u32 %s1225_s1, 4  ;;  %s19_s29 = int_to_ptr.vmem [resolvable:$true] %s18_s29 }
   0x3   :  { %16 = dma.vmem_to_smem %s14_s26, 128, %s891_s30, [#allocation4] }
   0x4   :  { %21 = dma.vmem_to_smem %s19_s29, 16, %s892_s8, [#allocation4] }
   0x5   :  { %881 = dma.done.wait [#allocation4], 144 }
   0x6   :  { %882 = vsyncadd [#allocation4], 4294967152 }
   0x7   :  { %24 = sfence }
   0x8   :  { %25 = vsyncpa [#allocation8], 0 }
   0x9   :  { %26 = vsyncpa [#allocation11], 0 }
   0xa   :  { %27 = vsyncpa [#allocation14], 0 }
   0xb   :  { %28 = vsyncpa [#allocation9], 0  ;;  %s46_s0 = sshll.u32 %s1220_s3, 4  ;;  %s893_s11 = smov [#allocation10]   ;;  %s47_s0 = int_to_ptr.hbm [resolvable:$true] %s46_s0 }
   0xc   :  { %s48_s1 = sshll.u32 %s893_s11, 4  ;;  %s33_s14 = sshll.u32 %s1219_s2, 4  ;;  %s49_s1 = int_to_ptr.vmem [resolvable:$true] %s48_s1  ;;  %s34_s14 = int_to_ptr.hbm [resolvable:$true] %s33_s14 }
   0xd   :  { %s894_s15 = smov 128   ;;  %s895_s16 = smov 8  }
   0xe   :  { %54 = dma.hbm_to_vmem [thread:$0]  %s47_s0, 512, %s49_s1, [#allocation11], %s894_s15, %s894_s15, %s895_s16  }
   0xf   :  { %s896_s17 = smov [#allocation7]   ;;  %s61_s21 = sshll.u32 %s1222_s5, 4  ;;  %s62_s21 = int_to_ptr.hbm [resolvable:$true] %s61_s21 }
  0x10   :  { %s35_s18 = sshll.u32 %s896_s17, 4  ;;  %s74_s23 = sshll.u32 %s1223_s6, 4  ;;  %s36_s18 = int_to_ptr.vmem [resolvable:$true] %s35_s18  ;;  %s75_s23 = int_to_ptr.hbm [resolvable:$true] %s74_s23 }
  0x11   :  { %41 = dma.hbm_to_vmem [thread:$0]  %s34_s14, 256, %s36_s18, [#allocation8], %s894_s15, %s894_s15, %s895_s16  }
  0x12   :  { %s897_s24 = smov [#allocation12]   ;;  %s898_s2 = smov [#allocation13]  }
  0x13   :  { %s63_s25 = sshll.u32 %s897_s24, 4  ;;  %s76_s26 = sshll.u32 %s898_s2, 4  ;;  %s64_s25 = int_to_ptr.vmem [resolvable:$true] %s63_s25  ;;  %s77_s26 = int_to_ptr.vmem [resolvable:$true] %s76_s26 }
  0x14   :  { %69 = dma.hbm_to_vmem [thread:$0]  %s62_s21, 2048, %s64_s25, [#allocation11], %s894_s15, %s894_s15, %s895_s16  }
  0x15   :  { %82 = dma.hbm_to_vmem [thread:$0]  %s75_s23, 2048, %s77_s26, [#allocation14], %s894_s15, %s894_s15, %s895_s16  }
  0x16   :  { %883 = dma.done.wait [#allocation8], 256  }
  0x17   :  { %884 = vsyncadd [#allocation8], 4294967040 }
  0x18   :  { %885 = dma.done.wait [#allocation11], 2560  }
  0x19   :  { %886 = vsyncadd [#allocation11], 4294964736 }
  0x1a   :  { %887 = dma.done.wait [#allocation14], 2048  }
  0x1b   :  { %888 = vsyncadd [#allocation14], 4294965248  ;;  %v899_v0 = vmov 0.0   ;;  %s1226_s5 = smov 1   ;;  %v105_v1 = vld [vmem:[#allocation10 + $0x18] sm:$0xff]  ;;  %v104_v2 = vld [vmem:[#allocation10 + $0x10] sm:$0xff] }
  0x1c   :  { %469 = vrot.lane.b32.xlu0 %v899_v0, %s1226_s5  ;;  %126 = vmatpush.msra.mxu0 %v105_v1  ;;  %v103_v3 = vld [vmem:[#allocation10 + $0x8] sm:$0xff]  ;;  %v102_v4 = vld [vmem:[#allocation10] sm:$0xff]  ;;  %v100_v5 = vld [vmem:[#allocation7] sm:$0xff]  ;;  %vm107_vm0 = vcmask 261120   ;;  %s962_s6 = sld [smem:[#allocation6]] }
  0x1d   :  { %v101_v6 = vld [vmem:[#allocation7 + $0x8] sm:$0xff]  ;;  %s964_s27 = sld [smem:[#allocation6 + $0x1]]  ;;  %v1002_v7 = vld [vmem:[%s1221_s4] sm:$0xff] }
  0x1e   :  { %127 = vmatpush.msra.mxu0 %v104_v2  ;;  %s967_s28 = sld [smem:[#allocation5]]  ;;  %v106_v8 = vperm.slane %v1002_v7, 0  ;;  %v137_v9 = vperm.slane %v1002_v7, 1  ;;  %v1179_v25 = vperm.slane %v1002_v7, 2 }
  0x1f   :  { %s970_s29 = sld [smem:[#allocation5 + $0x1]] }
  0x20   :  { %128 = vmatpush.msra.mxu0 %v103_v3  ;;  %s975_s8 = sld [smem:[#allocation5 + $0x80]] }
  0x21   :  { %s980_s10 = sld [smem:[#allocation5 + $0x81]] }
  0x22   :  { %129 = vmatpush.msra.mxu0 %v102_v4  ;;  %p143_p0 = scmp.gt.s32.totalorder %s962_s6, 0  ;;  %p163_p2 = scmp.gt.s32.totalorder %s962_s6, 1 }
  0x23   :  { %658 = vmatmul.msk.f32.vlgmr.msra.gmra.mxu0 %vm107_vm0, %v100_v5  ;;  %p153_p1 = scmp.gt.s32.totalorder %s964_s27, 0  ;;  %p174_p3 = scmp.gt.s32.totalorder %s964_s27, 1 }
  0x24   :  { %s973_s30 = scalar_select %p143_p0, 1, 0 }
  0x25   :  { %s978_s9 = scalar_select %p153_p1, 1, 0 }
  0x26   :  { %p184_p4 = scmp.gt.s32.totalorder %s962_s6, 2  ;;  %s987_s1 = sld [smem:[#allocation5 + $0x100]]  ;;  %v148_v16 = vstv %s973_s30 }
  0x27   :  { %s983_s0 = scalar_select %p163_p2, 1, 0  ;;  %v158_v17 = vstv %s978_s9  ;;  %vm1057_vm1 = vcmp.eq.s32.totalorder %v148_v16, 1 }
  0x28   :  { %s985_s11 = scalar_select %p174_p3, 1, 0  ;;  %vm1061_vm2 = vcmp.eq.s32.totalorder %v158_v17, 1 }
  0x29   :  { %p195_p5 = scmp.gt.s32.totalorder %s964_s27, 2  ;;  %s992_s13 = sld [smem:[#allocation5 + $0x101]]  ;;  %v168_v18 = vstv %s983_s0 }
  0x2a   :  { %s990_s12 = scalar_select %p184_p4, 1, 0  ;;  %v179_v19 = vstv %s985_s11  ;;  %vm1065_vm3 = vcmp.eq.s32.totalorder %v168_v18, 1 }
  0x2b   :  { %659 = vmatmul.msk.f32.gmra.mxu0 %vm107_vm0, %v101_v6  ;;  %s994_s14 = sld [smem:[#allocation5 + $0x180]]  ;;  %p205_p6 = scmp.gt.s32.totalorder %s962_s6, 3  ;;  %vm1071_vm4 = vcmp.eq.s32.totalorder %v179_v19, 1 }
  0x2c   :  { %s997_s15 = sld [smem:[#allocation5 + $0x181]]  ;;  %p216_p7 = scmp.gt.s32.totalorder %s964_s27, 3  ;;  %v189_v20 = vstv %s990_s12 }
  0x2d   :  { %s1004_s18 = scalar_select %p195_p5, 1, 0  ;;  %vm1075_vm5 = vcmp.eq.s32.totalorder %v189_v20, 1 }
  0x2e   :  { %s1008_s19 = scalar_select %p205_p6, 1, 0 }
  0x2f   :  { %p226_p8 = scmp.gt.s32.totalorder %s962_s6, 4  ;;  %s1011_s20 = sld [smem:[#allocation5 + $0x200]]  ;;  %v200_v21 = vstv %s1004_s18 }
  0x30   :  { %s1014_s21 = scalar_select %p216_p7, 1, 0  ;;  %vm1079_vm6 = vcmp.eq.s32.totalorder %v200_v21, 1  ;;  %v210_v28 = vstv %s1008_s19  ;;  %v1176_v21 = vperm.slane %v1002_v7, 3 }
  0x31   :  { %p237_p9 = scmp.gt.s32.totalorder %s964_s27, 4  ;;  %s1017_s4 = sld [smem:[#allocation5 + $0x201]]  ;;  %vm1099_vm7 = vcmp.eq.s32.totalorder %v210_v28, 1 }
  0x32   :  { %p247_p10 = scmp.gt.s32.totalorder %s962_s6, 5  ;;  %s1024_s23 = sld [smem:[#allocation5 + $0x280]]  ;;  %v221_v32 = vstv %s1014_s21 }
  0x33   :  { %s1020_s3 = scalar_select %p226_p8, 1, 0  ;;  %vm1107_vm8 = vcmp.eq.s32.totalorder %v221_v32, 1 }
  0x34   :  { %s1022_s22 = scalar_select %p237_p9, 1, 0 }
  0x35   :  { %p258_p11 = scmp.gt.s32.totalorder %s964_s27, 5  ;;  %s1029_s25 = sld [smem:[#allocation5 + $0x281]]  ;;  %v231_v37 = vstv %s1020_s3 }
  0x36   :  { %s1027_s24 = scalar_select %p247_p10, 1, 0  ;;  %v242_v41 = vstv %s1022_s22  ;;  %vm1115_vm9 = vcmp.eq.s32.totalorder %v231_v37, 1 }
  0x37   :  { %p268_p12 = scmp.gt.s32.totalorder %s962_s6, 6  ;;  %s1032_s2 = sld [smem:[#allocation5 + $0x300]]  ;;  %vm1123_vm10 = vcmp.eq.s32.totalorder %v242_v41, 1 }
  0x38   :  { %s1034_s26 = scalar_select %p258_p11, 1, 0  ;;  %v252_v45 = vstv %s1027_s24 }
  0x39   :  { %s1036_s16 = sld [smem:[#allocation5 + $0x301]]  ;;  %p279_p13 = scmp.gt.s32.totalorder %s964_s27, 6  ;;  %vm1131_vm11 = vcmp.eq.s32.totalorder %v252_v45, 1 }
  0x3a   :  { %s1039_s17 = sld [smem:[#allocation5 + $0x380]]  ;;  %p289_p0 = scmp.gt.s32.totalorder %s962_s6, 7  ;;  %v263_v49 = vstv %s1034_s26 }
  0x3b   :  { %s1041_s5 = scalar_select %p268_p12, 1, 0  ;;  %vm1139_vm12 = vcmp.eq.s32.totalorder %v263_v49, 1 }
  0x3c   :  { %s1044_s7 = sld [smem:[#allocation5 + $0x381]]  ;;  %p300_p1 = scmp.gt.s32.totalorder %s964_s27, 7 }
  0x3d   :  { %1229 = sst [smem:[#allocation21_spill]] %s1032_s2  ;;  %s145_s27 = scalar_lea.vmem [#allocation2], %s967_s28  ;;  %v273_v53 = vstv %s1041_s5 }
  0x3e   :  { %s1050_s2 = scalar_select %p279_p13, 1, 0  ;;  %vm1147_vm13 = vcmp.eq.s32.totalorder %v273_v53, 1 }
  0x3f   :  { %s1069_s6 = scalar_select %p300_p1, 1, 0 }
  0x40   :  { %1230 = sst [smem:[#allocation22_spill]] %s1039_s17  ;;  %s155_s30 = scalar_lea.vmem [#allocation2], %s970_s29  ;;  %v284_v57 = vstv %s1050_s2 }
  0x41   :  { %s1055_s17 = scalar_select %p289_p0, 1, 0  ;;  %v305_v2 = vstv %s1069_s6  ;;  %vm1155_vm14 = vcmp.eq.s32.totalorder %v284_v57, 1 }
  0x42   :  { %s165_s9 = scalar_lea.vmem [#allocation2], %s975_s8  ;;  %s176_s0 = scalar_lea.vmem [#allocation2], %s980_s10  ;;  %vm306_vm0 = vcmp.eq.s32.totalorder %v305_v2, 1 }
  0x43   :  { %s186_s28 = scalar_lea.vmem [#allocation2], %s987_s1  ;;  %s197_s29 = scalar_lea.vmem [#allocation2], %s992_s13  ;;  %v294_v61 = vstv %s1055_s17 }
  0x44   :  { %s207_s8 = scalar_lea.vmem [#allocation2], %s994_s14  ;;  %s218_s10 = scalar_lea.vmem [#allocation2], %s997_s15  ;;  %vm1162_vm15 = vcmp.eq.s32.totalorder %v294_v61, 1 }
  0x45   :  { %s228_s11 = scalar_lea.vmem [#allocation2], %s1011_s20  ;;  %s239_s1 = scalar_lea.vmem [#allocation2], %s1017_s4 }
  0x46   :  { %s1253_s5 = sld [smem:[#allocation21_spill]]  ;;  %s249_s12 = scalar_lea.vmem [#allocation2], %s1024_s23 }
  0x47   :  { %s1258_s13 = sld [smem:[#allocation22_spill]]  ;;  %s260_s14 = scalar_lea.vmem [#allocation2], %s1029_s25 }
  0x48   :  { %s281_s18 = scalar_lea.vmem [#allocation2], %s1036_s16  ;;  %s302_s20 = scalar_lea.vmem [#allocation2], %s1044_s7 }
  0x49   :  { %s1263_s7 = smov 1   ;;  %s901_s21 = smov [#allocation15]  }
  0x4a   :  { %s628_s4 = sshll.u32 %s901_s21, 4  ;;  %s1264_s23 = sld [smem:[#allocation23_spill]]  ;;  %s629_s4 = int_to_ptr.vmem [resolvable:$true] %s628_s4 }
  0x4c   :  { %s270_s15 = scalar_lea.vmem [#allocation2], %s1253_s5 }
  0x4d   :  { %s291_s19 = scalar_lea.vmem [#allocation2], %s1258_s13 }
  0x50   :  { %s630_s24 = sshll.u32 %s1264_s23, 4  ;;  %s631_s24 = int_to_ptr.hbm [resolvable:$true] %s630_s24 }
  0x8e   :  { %v470_v23 = vpop.permute.xlu0 %469 }
  0x8f   :  { %v472_v26 = vmul.f32 %v1176_v21, %v470_v23 }
  0xa0   :  { %v131_v10 = vpop.f32.mrf.mxu0 }
  0xa1   :  { %v132_v11 = vadd.f32 %v131_v10, %v106_v8 }
  0xa3   :  { %v138_v12 = vmax.f32 %v132_v11, %v137_v9 }
  0xa5   :  { %140 = vst [vmem:[#allocation2] sm:$0xff] %v138_v12 }
  0xa8   :  { %v134_v13 = vpop.f32.mrf.mxu0 }
  0xa9   :  { %v135_v14 = vadd.f32 %v134_v13, %v106_v8 }
  0xab   :  { %v139_v15 = vmax.f32 %v135_v14, %v137_v9 }
  0xad   :  { %141 = vst [vmem:[#allocation2 + $0x8] sm:$0xff] %v139_v15 }
  0xb4   :  { %v146_v29 = vld [vmem:[%s145_s27] sm:$0x1] }
  0xb5   :  { %v156_v30 = vld [vmem:[%s155_s30] sm:$0x1]  ;;  %v150_v33 = vsel %vm1057_vm1, %v146_v29, -100000.0 }
  0xb6   :  { %v166_v31 = vld [vmem:[%s165_s9] sm:$0x1]  ;;  %v160_v34 = vsel %vm1061_vm2, %v156_v30, -100000.0  ;;  %151 = vst [vmem:[#allocation3] sm:$0x1] %v150_v33 }
  0xb7   :  { %v170_v35 = vsel %vm1065_vm3, %v166_v31, -100000.0  ;;  %v177_v36 = vld [vmem:[%s176_s0] sm:$0x1]  ;;  %161 = vst [vmem:[#allocation3 + $0x1] sm:$0x1] %v160_v34  ;;  %v474_v31 = vadd.f32 %v1179_v25, %v472_v26 }
  0xb8   :  { %v181_v38 = vsel %vm1071_vm4, %v177_v36, -100000.0  ;;  %v187_v39 = vld [vmem:[%s186_s28] sm:$0x1]  ;;  %172 = vst [vmem:[#allocation3 + $0x2] sm:$0x1] %v170_v35 }
  0xb9   :  { %v191_v42 = vsel %vm1075_vm5, %v187_v39, -100000.0  ;;  %v198_v43 = vld [vmem:[%s197_s29] sm:$0x1]  ;;  %182 = vst [vmem:[#allocation3 + $0x3] sm:$0x1] %v181_v38 }
  0xba   :  { %v202_v46 = vsel %vm1079_vm6, %v198_v43, -100000.0  ;;  %v208_v47 = vld [vmem:[%s207_s8] sm:$0x1]  ;;  %193 = vst [vmem:[#allocation3 + $0x4] sm:$0x1] %v191_v42 }
  0xbb   :  { %v212_v50 = vsel %vm1099_vm7, %v208_v47, -100000.0  ;;  %v219_v51 = vld [vmem:[%s218_s10] sm:$0x1]  ;;  %203 = vst [vmem:[#allocation3 + $0x5] sm:$0x1] %v202_v46 }
  0xbc   :  { %v223_v54 = vsel %vm1107_vm8, %v219_v51, -100000.0  ;;  %v229_v55 = vld [vmem:[%s228_s11] sm:$0x1]  ;;  %214 = vst [vmem:[#allocation3 + $0x6] sm:$0x1] %v212_v50 }
  0xbd   :  { %v233_v58 = vsel %vm1115_vm9, %v229_v55, -100000.0  ;;  %v240_v59 = vld [vmem:[%s239_s1] sm:$0x1]  ;;  %224 = vst [vmem:[#allocation3 + $0x7] sm:$0x1] %v223_v54 }
  0xbe   :  { %v244_v62 = vsel %vm1123_vm10, %v240_v59, -100000.0  ;;  %v250_v63 = vld [vmem:[%s249_s12] sm:$0x1]  ;;  %235 = vst [vmem:[#allocation3 + $0x8] sm:$0x1] %v233_v58 }
  0xbf   :  { %v254_v3 = vsel %vm1131_vm11, %v250_v63, -100000.0  ;;  %v261_v4 = vld [vmem:[%s260_s14] sm:$0x1]  ;;  %245 = vst [vmem:[#allocation3 + $0x9] sm:$0x1] %v244_v62 }
  0xc0   :  { %v265_v6 = vsel %vm1139_vm12, %v261_v4, -100000.0  ;;  %v271_v8 = vld [vmem:[%s270_s15] sm:$0x1]  ;;  %256 = vst [vmem:[#allocation3 + $0xa] sm:$0x1] %v254_v3 }
  0xc1   :  { %v275_v10 = vsel %vm1147_vm13, %v271_v8, -100000.0  ;;  %v282_v11 = vld [vmem:[%s281_s18] sm:$0x1]  ;;  %266 = vst [vmem:[#allocation3 + $0xb] sm:$0x1] %v265_v6 }
  0xc2   :  { %v286_v12 = vsel %vm1155_vm14, %v282_v11, -100000.0  ;;  %v292_v13 = vld [vmem:[%s291_s19] sm:$0x1]  ;;  %277 = vst [vmem:[#allocation3 + $0xc] sm:$0x1] %v275_v10 }
  0xc3   :  { %v296_v14 = vsel %vm1162_vm15, %v292_v13, -100000.0  ;;  %v303_v15 = vld [vmem:[%s302_s20] sm:$0x1]  ;;  %v309_v17 = vld [vmem:[#allocation3] sm:$0x3] }
  0xc4   :  { %v307_v16 = vsel %vm306_vm0, %v303_v15, -100000.0  ;;  %287 = vst [vmem:[#allocation3 + $0xd] sm:$0x1] %v286_v12  ;;  %v683_v18 = vmul.f32 -1.442695, %v309_v17 }
  0xc5   :  { %298 = vst [vmem:[#allocation3 + $0xe] sm:$0x1] %v296_v14  ;;  %v310_v37 = vld [vmem:[#allocation3 + $0x2] sm:$0x3]  ;;  %v311_v57 = vld [vmem:[#allocation3 + $0x4] sm:$0x3] }
  0xc6   :  { %308 = vst [vmem:[#allocation3 + $0xf] sm:$0x1] %v307_v16  ;;  %703 = vpow2.f32 %v683_v18  ;;  %v684_v38 = vmul.f32 -1.442695, %v310_v37  ;;  %v685_v58 = vmul.f32 -1.442695, %v311_v57 }
  0xc7   :  { %v312_v14 = vld [vmem:[#allocation3 + $0x6] sm:$0x3] }
  0xc8   :  { %v686_v15 = vmul.f32 -1.442695, %v312_v14 }
  0xcc   :  { %v704_v19 = vpop.eup %703 }
  0xcd   :  { %v341_v20 = vadd.f32 1.0, %v704_v19 }
  0xcf   :  { %705 = vrcp.f32 %v341_v20  ;;  %v360_v28 = vand.u32 2147483648, %v341_v20  ;;  %v358_v30 = vand.u32 2147483647, %v341_v20  ;;  %vm354_vm2 = vweird.f32 %v341_v20 }
  0xd0   :  { %707 = vpow2.f32 %v684_v38 }
  0xd1   :  { %v361_v33 = vor.u32 1.1754944e-38, %v360_v28  ;;  %vm359_vm4 = vcmp.eq.f32.partialorder %v358_v30, 8.507059e+37 }
  0xd5   :  { %v706_v22 = vpop.eup %705 }
  0xd6   :  { %v350_v24 = vmul.f32 %v706_v22, %v341_v20  ;;  %vm355_vm1 = vweird.f32 %v706_v22  ;;  %v708_v39 = vpop.eup %707 }
  0xd7   :  { %vm356_vm3 = vmor %vm354_vm2, %vm355_vm1  ;;  %v342_v40 = vadd.f32 1.0, %v708_v39 }
  0xd8   :  { %v351_v27 = vsub.f32 1.0, %v350_v24 }
  0xd9   :  { %709 = vrcp.f32 %v342_v40  ;;  %v375_v46 = vand.u32 2147483648, %v342_v40  ;;  %vm369_vm6 = vweird.f32 %v342_v40  ;;  %v373_v47 = vand.u32 2147483647, %v342_v40 }
  0xda   :  { %v352_v29 = vmul.f32 %v706_v22, %v351_v27  ;;  %711 = vpow2.f32 %v685_v58 }
  0xdb   :  { %v376_v51 = vor.u32 1.1754944e-38, %v375_v46  ;;  %vm374_vm8 = vcmp.eq.f32.partialorder %v373_v47, 8.507059e+37 }
  0xdc   :  { %v353_v32 = vadd.f32 %v706_v22, %v352_v29 }
  0xde   :  { %v357_v34 = vsel %vm356_vm3, %v706_v22, %v353_v32 }
  0xdf   :  { %v362_v35 = vsel %vm359_vm4, %v361_v33, %v357_v34  ;;  %v710_v41 = vpop.eup %709 }
  0xe0   :  { %v475_v36 = vmul.f32 %v474_v31, %v362_v35  ;;  %v365_v42 = vmul.f32 %v710_v41, %v342_v40  ;;  %vm370_vm5 = vweird.f32 %v710_v41  ;;  %v712_v59 = vpop.eup %711  ;;  %v313_v35 = vld [vmem:[#allocation3 + $0x8] sm:$0x3] }
  0xe1   :  { %vm371_vm7 = vmor %vm369_vm6, %vm370_vm5  ;;  %v343_v60 = vadd.f32 1.0, %v712_v59 }
  0xe2   :  { %477 = vrot.lane.b32.xlu0 %v475_v36, %s1263_s7  ;;  %v366_v43 = vsub.f32 1.0, %v365_v42  ;;  %v476_v55 = vmax.f32 %v475_v36, 0.0  ;;  %v687_v36 = vmul.f32 -1.442695, %v313_v35 }
  0xe3   :  { %713 = vrcp.f32 %v343_v60  ;;  %v390_v3 = vand.u32 2147483648, %v343_v60  ;;  %vm384_vm10 = vweird.f32 %v343_v60  ;;  %v388_v4 = vand.u32 2147483647, %v343_v60 }
  0xe4   :  { %v367_v44 = vmul.f32 %v710_v41, %v366_v43  ;;  %715 = vpow2.f32 %v686_v15  ;;  %v534_v15 = vld [vmem:[#allocation12 + $0x78] sm:$0xff] }
  0xe5   :  { %v391_v9 = vor.u32 1.1754944e-38, %v390_v3  ;;  %vm389_vm12 = vcmp.eq.f32.partialorder %v388_v4, 8.507059e+37  ;;  %535 = vmatpush.msra.mxu1 %v534_v15  ;;  %v596_v15 = vld [vmem:[#allocation13 + $0x60] sm:$0xff] }
  0xe6   :  { %v368_v45 = vadd.f32 %v710_v41, %v367_v44 }
  0xe8   :  { %v372_v50 = vsel %vm371_vm7, %v710_v41, %v368_v45 }
  0xe9   :  { %v377_v53 = vsel %vm374_vm8, %v376_v51, %v372_v50  ;;  %v714_v61 = vpop.eup %713 }
  0xea   :  { %v380_v62 = vmul.f32 %v714_v61, %v343_v60  ;;  %vm385_vm9 = vweird.f32 %v714_v61  ;;  %v716_v16 = vpop.eup %715 }
  0xeb   :  { %vm386_vm11 = vmor %vm384_vm10, %vm385_vm9  ;;  %v344_v17 = vadd.f32 1.0, %v716_v16  ;;  %v533_v16 = vld [vmem:[#allocation12 + $0x70] sm:$0xff] }
  0xec   :  { %v381_v63 = vsub.f32 1.0, %v380_v62  ;;  %536 = vmatpush.msra.mxu1 %v533_v16  ;;  %v595_v16 = vld [vmem:[#allocation13 + $0x58] sm:$0xff] }
  0xed   :  { %717 = vrcp.f32 %v344_v17  ;;  %v405_v24 = vand.u32 2147483648, %v344_v17  ;;  %vm399_vm14 = vweird.f32 %v344_v17  ;;  %v403_v26 = vand.u32 2147483647, %v344_v17 }
  0xee   :  { %v382_v1 = vmul.f32 %v714_v61, %v381_v63  ;;  %719 = vpow2.f32 %v687_v36 }
  0xef   :  { %v406_v30 = vor.u32 1.1754944e-38, %v405_v24  ;;  %vm404_vm0 = vcmp.eq.f32.partialorder %v403_v26, 8.507059e+37  ;;  %v528_v24 = vld [vmem:[#allocation12 + $0x48] sm:$0xff]  ;;  %v527_v26 = vld [vmem:[#allocation12 + $0x40] sm:$0xff] }
  0xf0   :  { %v383_v2 = vadd.f32 %v714_v61, %v382_v1 }
  0xf2   :  { %v387_v8 = vsel %vm386_vm11, %v714_v61, %v383_v2 }
  0xf3   :  { %v392_v11 = vsel %vm389_vm12, %v391_v9, %v387_v8  ;;  %v718_v18 = vpop.eup %717 }
  0xf4   :  { %v395_v19 = vmul.f32 %v718_v18, %v344_v17  ;;  %vm400_vm13 = vweird.f32 %v718_v18  ;;  %v720_v37 = vpop.eup %719  ;;  %v532_v17 = vld [vmem:[#allocation12 + $0x68] sm:$0xff] }
  0xf5   :  { %vm401_vm15 = vmor %vm399_vm14, %vm400_vm13  ;;  %v345_v38 = vadd.f32 1.0, %v720_v37  ;;  %537 = vmatpush.msra.mxu1 %v532_v17  ;;  %v594_v17 = vld [vmem:[#allocation13 + $0x50] sm:$0xff] }
  0xf6   :  { %v396_v20 = vsub.f32 1.0, %v395_v19  ;;  %v530_v19 = vld [vmem:[#allocation12 + $0x58] sm:$0xff] }
  0xf7   :  { %721 = vrcp.f32 %v345_v38  ;;  %v420_v44 = vand.u32 2147483648, %v345_v38  ;;  %vm414_vm2 = vweird.f32 %v345_v38  ;;  %v418_v45 = vand.u32 2147483647, %v345_v38 }
  0xf8   :  { %v397_v22 = vmul.f32 %v718_v18, %v396_v20 }
  0xf9   :  { %vm419_vm4 = vcmp.eq.f32.partialorder %v418_v45, 8.507059e+37 }
  0xfa   :  { %v398_v23 = vadd.f32 %v718_v18, %v397_v22  ;;  %v529_v22 = vld [vmem:[#allocation12 + $0x50] sm:$0xff] }
  0xfc   :  { %v402_v29 = vsel %vm401_vm15, %v718_v18, %v398_v23  ;;  %v531_v18 = vld [vmem:[#allocation12 + $0x60] sm:$0xff] }
  0xfd   :  { %v407_v32 = vsel %vm404_vm0, %v406_v30, %v402_v29  ;;  %v722_v39 = vpop.eup %721  ;;  %538 = vmatpush.msra.mxu1 %v531_v18  ;;  %v525_v29 = vld [vmem:[#allocation12 + $0x30] sm:$0xff]  ;;  %v593_v18 = vld [vmem:[#allocation13 + $0x48] sm:$0xff] }
  0xfe   :  { %v410_v40 = vmul.f32 %v722_v39, %v345_v38  ;;  %vm415_vm1 = vweird.f32 %v722_v39 }
  0xff   :  { %vm416_vm3 = vmor %vm414_vm2, %vm415_vm1  ;;  %539 = vmatpush.msra.mxu1 %v530_v19  ;;  %vm555_vm1 = vcmask 1041408   ;;  %v592_v19 = vld [vmem:[#allocation13 + $0x40] sm:$0xff] }
 0x100   :  { %v411_v41 = vsub.f32 1.0, %v410_v40 }
 0x101   :  { %540 = vmatpush.msra.mxu1 %v529_v22  ;;  %v590_v22 = vld [vmem:[#allocation13 + $0x30] sm:$0xff] }
 0x102   :  { %v412_v42 = vmul.f32 %v722_v39, %v411_v41 }
 0x103   :  { %541 = vmatpush.msra.mxu1 %v528_v24  ;;  %v589_v24 = vld [vmem:[#allocation13 + $0x28] sm:$0xff] }
 0x104   :  { %v413_v43 = vadd.f32 %v722_v39, %v412_v42 }
 0x105   :  { %542 = vmatpush.msra.mxu1 %v527_v26 }
 0x154   :  { %v478_v48 = vpop.permute.xlu0 %477 }
 0x155   :  { %v479_v49 = vmul.f32 %v478_v48, %v1176_v21  ;;  %v417_v48 = vsel %vm416_vm3, %v722_v39, %v413_v43 }
 0x157   :  { %v480_v52 = vadd.f32 %v479_v49, %v1179_v25  ;;  %v421_v49 = vor.u32 1.1754944e-38, %v420_v44  ;;  %v316_v44 = vld [vmem:[#allocation3 + $0xe] sm:$0x3] }
 0x158   :  { %v690_v45 = vmul.f32 -1.442695, %v316_v44 }
 0x159   :  { %v481_v54 = vmul.f32 %v480_v52, %v377_v53  ;;  %v422_v51 = vsel %vm419_vm4, %v421_v49, %v417_v48  ;;  %v521_v48 = vld [vmem:[#allocation12 + $0x10] sm:$0xff] }
 0x15b   :  { %483 = vrot.lane.b32.xlu1 %v481_v54, %s1263_s7  ;;  %v482_v56 = vmax.f32 %v476_v55, %v481_v54  ;;  %v314_v54 = vld [vmem:[#allocation3 + $0xa] sm:$0x3] }
 0x15c   :  { %v688_v55 = vmul.f32 -1.442695, %v314_v54 }
 0x15e   :  { %723 = vpow2.f32 %v688_v55 }
 0x1cd   :  { %v484_v5 = vpop.permute.xlu1 %483 }
 0x1ce   :  { %v485_v6 = vmul.f32 %v484_v5, %v1176_v21 }
 0x1d0   :  { %v486_v10 = vadd.f32 %v485_v6, %v1179_v25 }
 0x1d2   :  { %v487_v12 = vmul.f32 %v486_v10, %v392_v11  ;;  %v315_v11 = vld [vmem:[#allocation3 + $0xc] sm:$0x3] }
 0x1d4   :  { %489 = vrot.lane.b32.xlu1 %v487_v12, %s1263_s7  ;;  %v488_v13 = vmax.f32 %v482_v56, %v487_v12  ;;  %v724_v56 = vpop.eup %723  ;;  %v689_v12 = vmul.f32 -1.442695, %v315_v11 }
 0x1d5   :  { %v346_v57 = vadd.f32 1.0, %v724_v56 }
 0x1d7   :  { %725 = vrcp.f32 %v346_v57  ;;  %v435_v63 = vand.u32 2147483648, %v346_v57  ;;  %vm429_vm6 = vweird.f32 %v346_v57  ;;  %v433_v1 = vand.u32 2147483647, %v346_v57 }
 0x1d8   :  { %727 = vpow2.f32 %v689_v12 }
 0x1d9   :  { %v436_v5 = vor.u32 1.1754944e-38, %v435_v63  ;;  %vm434_vm8 = vcmp.eq.f32.partialorder %v433_v1, 8.507059e+37 }
 0x1dd   :  { %v726_v58 = vpop.eup %725 }
 0x1de   :  { %v425_v59 = vmul.f32 %v726_v58, %v346_v57  ;;  %vm430_vm5 = vweird.f32 %v726_v58 }
 0x1df   :  { %vm431_vm7 = vmor %vm429_vm6, %vm430_vm5 }
 0x1e0   :  { %v426_v60 = vsub.f32 1.0, %v425_v59 }
 0x1e2   :  { %v427_v61 = vmul.f32 %v726_v58, %v426_v60 }
 0x1e4   :  { %v428_v62 = vadd.f32 %v726_v58, %v427_v61 }
 0x1e6   :  { %v432_v4 = vsel %vm431_vm7, %v726_v58, %v428_v62 }
 0x1e7   :  { %v437_v8 = vsel %vm434_vm8, %v436_v5, %v432_v4 }
 0x246   :  { %v490_v27 = vpop.permute.xlu1 %489 }
 0x247   :  { %v491_v28 = vmul.f32 %v490_v27, %v1176_v21 }
 0x249   :  { %v492_v31 = vadd.f32 %v491_v28, %v1179_v25  ;;  %v526_v28 = vld [vmem:[#allocation12 + $0x38] sm:$0xff] }
 0x24a   :  { %543 = vmatpush.msra.mxu1 %v526_v28 }
 0x24b   :  { %v493_v33 = vmul.f32 %v492_v31, %v407_v32  ;;  %v524_v31 = vld [vmem:[#allocation12 + $0x28] sm:$0xff]  ;;  %v523_v32 = vld [vmem:[#allocation12 + $0x20] sm:$0xff] }
 0x24c   :  { %544 = vmatpush.msra.mxu1 %v525_v29  ;;  %v587_v29 = vld [vmem:[#allocation13 + $0x18] sm:$0xff] }
 0x24d   :  { %495 = vrot.lane.b32.xlu2 %v493_v33, %s1263_s7  ;;  %v494_v34 = vmax.f32 %v488_v13, %v493_v33  ;;  %v728_v13 = vpop.eup %727 }
 0x24e   :  { %v347_v14 = vadd.f32 1.0, %v728_v13  ;;  %545 = vmatpush.msra.mxu1 %v524_v31  ;;  %v585_v31 = vld [vmem:[#allocation13 + $0x8] sm:$0xff] }
 0x250   :  { %729 = vrcp.f32 %v347_v14  ;;  %546 = vmatpush.msra.mxu1 %v523_v32  ;;  %vm444_vm10 = vweird.f32 %v347_v14  ;;  %v448_v35 = vand.u32 2147483647, %v347_v14  ;;  %v584_v32 = vld [vmem:[#allocation13] sm:$0xff] }
 0x251   :  { %731 = vpow2.f32 %v690_v45 }
 0x252   :  { %vm449_vm12 = vcmp.eq.f32.partialorder %v448_v35, 8.507059e+37 }
 0x256   :  { %v730_v20 = vpop.eup %729 }
 0x257   :  { %v440_v23 = vmul.f32 %v730_v20, %v347_v14  ;;  %vm445_vm9 = vweird.f32 %v730_v20 }
 0x258   :  { %vm446_vm11 = vmor %vm444_vm10, %vm445_vm9 }
 0x259   :  { %v441_v27 = vsub.f32 1.0, %v440_v23 }
 0x25b   :  { %v442_v30 = vmul.f32 %v730_v20, %v441_v27  ;;  %v588_v27 = vld [vmem:[#allocation13 + $0x20] sm:$0xff] }
 0x25d   :  { %v443_v33 = vadd.f32 %v730_v20, %v442_v30  ;;  %v586_v30 = vld [vmem:[#allocation13 + $0x10] sm:$0xff] }
 0x25f   :  { %v447_v38 = vsel %vm446_vm11, %v730_v20, %v443_v33  ;;  %v591_v20 = vld [vmem:[#allocation13 + $0x38] sm:$0xff] }
 0x2a7   :  { %v496_v46 = vpop.permute.xlu2 %495 }
 0x2a8   :  { %v497_v47 = vmul.f32 %v496_v46, %v1176_v21  ;;  %v732_v46 = vpop.eup %731 }
 0x2a9   :  { %v348_v49 = vadd.f32 1.0, %v732_v46 }
 0x2aa   :  { %v498_v50 = vadd.f32 %v497_v47, %v1179_v25  ;;  %v522_v47 = vld [vmem:[#allocation12 + $0x18] sm:$0xff] }
 0x2ab   :  { %547 = vmatpush.msra.mxu1 %v522_v47  ;;  %733 = vrcp.f32 %v348_v49  ;;  %v465_v57 = vand.u32 2147483648, %v348_v49  ;;  %vm459_vm14 = vweird.f32 %v348_v49  ;;  %v463_v58 = vand.u32 2147483647, %v348_v49 }
 0x2ac   :  { %v499_v52 = vmul.f32 %v498_v50, %v422_v51  ;;  %v520_v50 = vld [vmem:[#allocation12 + $0x8] sm:$0xff]  ;;  %v519_v51 = vld [vmem:[#allocation12] sm:$0xff] }
 0x2ad   :  { %548 = vmatpush.msra.mxu1 %v521_v48  ;;  %v466_v62 = vor.u32 1.1754944e-38, %v465_v57  ;;  %vm464_vm0 = vcmp.eq.f32.partialorder %v463_v58, 8.507059e+37 }
 0x2ae   :  { %501 = vrot.lane.b32.xlu2 %v499_v52, %s1263_s7  ;;  %v500_v53 = vmax.f32 %v494_v34, %v499_v52  ;;  %v450_v34 = vand.u32 2147483648, %v347_v14  ;;  %v597_v14 = vld [vmem:[#allocation13 + $0x68] sm:$0xff] }
 0x2af   :  { %549 = vmatpush.msra.mxu1 %v520_v50 }
 0x2b0   :  { %v451_v39 = vor.u32 1.1754944e-38, %v450_v34 }
 0x2b1   :  { %550 = vmatpush.msra.mxu1 %v519_v51  ;;  %v734_v52 = vpop.eup %733 }
 0x2b2   :  { %v452_v41 = vsel %vm449_vm12, %v451_v39, %v447_v38  ;;  %vm460_vm13 = vweird.f32 %v734_v52 }
 0x2b3   :  { %vm461_vm15 = vmor %vm459_vm14, %vm460_vm13 }
 0x308   :  { %v502_v2 = vpop.permute.xlu2 %501 }
 0x309   :  { %v503_v3 = vmul.f32 %v502_v2, %v1176_v21 }
 0x30b   :  { %v504_v6 = vadd.f32 %v503_v3, %v1179_v25 }
 0x30d   :  { %v505_v9 = vmul.f32 %v504_v6, %v437_v8  ;;  %v599_v6 = vld [vmem:[#allocation13 + $0x78] sm:$0xff]  ;;  %v598_v8 = vld [vmem:[#allocation13 + $0x70] sm:$0xff] }
 0x30e   :  { %601 = vmatpush.msra.mxu2 %v599_v6 }
 0x30f   :  { %507 = vrot.lane.b32.xlu0 %v505_v9, %s1263_s7  ;;  %v1199_v10 = vmax.f32 %v500_v53, %v505_v9  ;;  %v455_v53 = vmul.f32 %v734_v52, %v348_v49  ;;  %v561_v9 = vperm.slane %v1002_v7, 4 }
 0x310   :  { %602 = vmatpush.msra.mxu2 %v598_v8 }
 0x311   :  { %v456_v54 = vsub.f32 1.0, %v455_v53 }
 0x312   :  { %603 = vmatpush.msra.mxu2 %v597_v14 }
 0x313   :  { %v457_v55 = vmul.f32 %v734_v52, %v456_v54 }
 0x314   :  { %604 = vmatpush.msra.mxu2 %v596_v15 }
 0x315   :  { %v458_v56 = vadd.f32 %v734_v52, %v457_v55 }
 0x316   :  { %605 = vmatpush.msra.mxu2 %v595_v16 }
 0x317   :  { %v462_v61 = vsel %vm461_vm15, %v734_v52, %v458_v56 }
 0x318   :  { %v467_v1 = vsel %vm464_vm0, %v466_v62, %v462_v61  ;;  %606 = vmatpush.msra.mxu2 %v594_v17 }
 0x31a   :  { %607 = vmatpush.msra.mxu2 %v593_v18 }
 0x31c   :  { %608 = vmatpush.msra.mxu2 %v592_v19 }
 0x31e   :  { %609 = vmatpush.msra.mxu2 %v591_v20 }
 0x320   :  { %610 = vmatpush.msra.mxu2 %v590_v22 }
 0x322   :  { %611 = vmatpush.msra.mxu2 %v589_v24 }
 0x324   :  { %612 = vmatpush.msra.mxu2 %v588_v27 }
 0x326   :  { %613 = vmatpush.msra.mxu2 %v587_v29 }
 0x328   :  { %614 = vmatpush.msra.mxu2 %v586_v30 }
 0x32a   :  { %615 = vmatpush.msra.mxu2 %v585_v31 }
 0x32c   :  { %616 = vmatpush.msra.mxu2 %v584_v32 }
 0x381   :  { %v508_v36 = vpop.permute.xlu0 %507 }
 0x382   :  { %v509_v37 = vmul.f32 %v508_v36, %v1176_v21 }
 0x384   :  { %v510_v40 = vadd.f32 %v509_v37, %v1179_v25 }
 0x386   :  { %v511_v42 = vmul.f32 %v510_v40, %v452_v41 }
 0x388   :  { %513 = vrot.lane.b32.xlu1 %v511_v42, %s1263_s7  ;;  %v512_v43 = vmax.f32 %v1199_v10, %v511_v42 }
 0x3fa   :  { %v514_v59 = vpop.permute.xlu1 %513 }
 0x3fb   :  { %v515_v60 = vmul.f32 %v514_v59, %v1176_v21 }
 0x3fd   :  { %v516_v63 = vadd.f32 %v515_v60, %v1179_v25 }
 0x3ff   :  { %v517_v2 = vmul.f32 %v516_v63, %v467_v1 }
 0x401   :  { %v518_v3 = vmax.f32 %v512_v43, %v517_v2  ;;  %v600_v43 = vperm.slane %v1002_v7, 5 }
 0x403   :  { %551 = vmatmul.f32.vlgmr.msra.gmra.mxu1 %v518_v3 }
 0x480   :  { %v1207_v4 = vpop.f32.mrf.mxu1 }
 0x481   :  { %v556_v5 = vsel %vm555_vm1, %v1207_v4, 0.0 }
 0x482   :  { %557 = vadd.xlane.f32.xlu2 %v556_v5 }
 0x4f5   :  { %v558_v21 = vpop.xlane.xlu2 %557 }
 0x4f6   :  { %v559_v10 = vmul.f32 0.083333336, %v558_v21 }
 0x4f8   :  { %v560_v25 = vsub.f32 %v1207_v4, %v559_v10 }
 0x4fa   :  { %v562_v11 = vmul.f32 %v561_v9, %v560_v25 }
 0x4fc   :  { %v563_v12 = vmul.f32 %v562_v11, %v562_v11 }
 0x4fe   :  { %v564_v13 = vsel %vm555_vm1, %v563_v12, 0.0 }
 0x4ff   :  { %565 = vadd.xlane.f32.xlu0 %v564_v13 }
 0x572   :  { %v566_v23 = vpop.xlane.xlu0 %565 }
 0x573   :  { %v567_v26 = vmul.f32 0.083333336, %v566_v23 }
 0x575   :  { %v568_v28 = vadd.f32 1e-05, %v567_v26 }
 0x577   :  { %735 = vrsqrt.f32 %v568_v28  ;;  %vm575_vm3 = vweird.f32 %v568_v28 }
 0x57d   :  { %v736_v33 = vpop.eup %735 }
 0x57e   :  { %v570_v34 = vmul.f32 %v736_v33, %v568_v28  ;;  %vm576_vm2 = vweird.f32 %v736_v33 }
 0x57f   :  { %vm577_vm4 = vmor %vm575_vm3, %vm576_vm2 }
 0x580   :  { %v571_v35 = vmul.f32 %v736_v33, %v570_v34 }
 0x582   :  { %v572_v36 = vmul.f32 0.5, %v571_v35 }
 0x584   :  { %v573_v37 = vsub.f32 1.5, %v572_v36 }
 0x586   :  { %v574_v38 = vmul.f32 %v736_v33, %v573_v37 }
 0x588   :  { %v578_v39 = vsel %vm577_vm4, %v736_v33, %v574_v38 }
 0x589   :  { %v579_v40 = vmul.f32 %v578_v39, %v562_v11 }
 0x58b   :  { %vm580_vm5 = vcmp.gt.f32.partialorder %v579_v40, 0.0 }
 0x58c   :  { %v691_v41 = vsel %vm580_vm5, 1.0, %v899_v0 }
 0x58d   :  { %v583_v42 = vmul.f32 %v691_v41, %v561_v9 }
 0x58f   :  { %617 = vmatmul.f32.vlgmr.msra.gmra.mxu2 %v583_v42 }
 0x612   :  { %v618_v44 = vpop.f32.mrf.mxu2 }
 0x613   :  { %v619_v45 = vadd.f32 %v618_v44, %v600_v43 }
 0x615   :  { %v621_v46 = vadd.f32 %v619_v45, %v1207_v4 }
 0x617   :  { %622 = vst [vmem:[#allocation15] sm:$0x3] %v621_v46 }
 0x618   :  { %633 = dma.vmem_to_hbm [thread:$0]  %s629_s4, 32, %s631_s24, [#allocation9]  }
 0x619   :  { %889 = dma.done.wait [#allocation9], 32  }
 0x61a   :  { %890 = vsyncadd [#allocation9], 4294967264 }
 0x61b   :  { %638 = vsyncpa [#allocation8], 1 }
 0x61c   :  { %639 = vsyncpa [#allocation11], 1 }
 0x61d   :  { %640 = vsyncpa [#allocation14], 1 }
 0x61e   :  { %641 = vsyncpa [#allocation9], 1 }

</bundles_post_ra>
